<compile_context>
chip_gen: v7x
topology: tpu7x:2x2x1
jax: 0.10.0
libtpu: 0.0.40
codegen_flags: <defaults>
</compile_context>

<pallas_src>
import math
import functools

import jax
import jax.numpy as jnp
from jax.experimental import pallas as pl
from jax.experimental.pallas import tpu as pltpu

MXU_DTYPE = jnp.bfloat16  # set to jnp.float32 for bit-faithful PyTorch matmuls


# ------------------------------- kernel ------------------------------------ #

def _layer_norm(x, gamma, beta, eps=1e-5):
    mean = jnp.mean(x, axis=-1, keepdims=True)
    var = jnp.mean(jnp.square(x - mean), axis=-1, keepdims=True)
    return (x - mean) * jax.lax.rsqrt(var + eps) * gamma + beta


def _fused_transformer_kernel(
        src_ref, pe_ref, emb_w_ref, emb_b_ref,
        wqkv_ref, bqkv_ref, wo_ref, bo_ref,
        g1_ref, be1_ref, w1_ref, b1_ref, w2_ref, b2_ref, g2_ref, be2_ref,
        dec_w_ref, dec_b_ref,
        out_ref,
        *, batch, seq, num_heads, mxu_dtype):
    B, S, H = batch, seq, num_heads
    BS = B * S
    D = emb_w_ref.shape[1]
    dh = D // H
    inv_sqrt_dh = 1.0 / math.sqrt(dh)
    L = wqkv_ref.shape[0]

    def mm(a, w):
        # (M, K) @ (K, N) on the MXU, bf16 operands, f32 accumulation.
        return jax.lax.dot_general(
            a.astype(mxu_dtype), w.astype(mxu_dtype),
            dimension_numbers=(((1,), (0,)), ((), ())),
            preferred_element_type=jnp.float32)

    # ---- embedding + positional encoding ------------------------------------
    # sqrt(model_dim) scale is folded into emb_w / emb_b host-side;
    # dropout = identity (eval mode).
    x = mm(src_ref[...], emb_w_ref[...]) + emb_b_ref[...] + pe_ref[...]  # (BS, D)

    # ---- encoder layers (PyTorch post-norm, ReLU activation) ----------------
    # TODO(synk): switch to lax.fori_loop / a layer grid axis with streamed,
    # double-buffered weights once L grows beyond a few layers.
    for l in range(L):
        # Fused QKV projection: (BS, D) @ (D, 3D) -> (BS, 3D).  Weight columns
        # are host-side permuted so head h's [q|k|v] is one contiguous block.
        qkv = mm(x, wqkv_ref[l]) + bqkv_ref[l]                 # (BS, 3D) f32
        qkv_b = qkv.reshape(B, S, 3 * D)                       # leading split

        # Head stack: one lane slice per head + one leading-axis concat.
        heads = jnp.concatenate(
            [qkv_b[:, :, h * 3 * dh:(h + 1) * 3 * dh][None] for h in range(H)],
            axis=0)                                            # (H, B, S, 3dh)
        heads = heads.reshape(H * B, S, 3 * dh).astype(mxu_dtype)
        qh = heads[..., 0 * dh:1 * dh]                         # (H*B, S, dh)
        kh = heads[..., 1 * dh:2 * dh]
        vh = heads[..., 2 * dh:3 * dh]

        # Batched-head scaled dot-product attention (f32 softmax).
        s = jnp.einsum('hqd,hkd->hqk', qh, kh,
                       preferred_element_type=jnp.float32) * inv_sqrt_dh
        # TODO(synk): no attention / key-padding mask path (module uses none).
        s = s - jnp.max(s, axis=-1, keepdims=True)
        p = jnp.exp(s)
        p = p * pl.reciprocal(jnp.sum(p, axis=-1, keepdims=True), approx=True)
        ctx_h = jnp.einsum('hqk,hkd->hqd', p.astype(mxu_dtype), vh,
                           preferred_element_type=jnp.float32)  # (H*B, S, dh)

        # Merge heads: H leading-index reads + one lane concat, then free merge.
        ctx4 = ctx_h.reshape(H, B, S, dh)
        ctx = jnp.concatenate([ctx4[h] for h in range(H)], axis=-1)  # (B, S, D)
        ctx = ctx.reshape(BS, D)

        # Output projection + residual + LayerNorm1.
        attn = mm(ctx, wo_ref[l]) + bo_ref[l]
        x = _layer_norm(x + attn, g1_ref[l], be1_ref[l])

        # Feed-forward (ReLU) + residual + LayerNorm2.
        hdn = jnp.maximum(mm(x, w1_ref[l]) + b1_ref[l], 0.0)   # (BS, FF)
        y = mm(hdn, w2_ref[l]) + b2_ref[l]                     # (BS, D)
        x = _layer_norm(x + y, g2_ref[l], be2_ref[l])

    # ---- decoder Linear(D, 1): VPU multiply + lane reduce (no M=1 matmul) ---
    # TODO(synk): at scale, emit a lane-dense (1, B*S) slab instead of this
    # 1-lane-wide column to avoid masked vst; negligible at these shapes.
    dec = jnp.sum(x * dec_w_ref[...], axis=-1, keepdims=True) + dec_b_ref[...]
    out_ref[...] = dec                                          # (BS, 1) f32


# ------------------------------- wrapper ----------------------------------- #

def transformer_forward(src_sbi, packed, *, model_dim, num_heads):
    """src_sbi: (S, B, input_dim) seq-first (like the PyTorch module).
    Returns (S, B, 1)."""
    assert model_dim % num_heads == 0, "model_dim must be divisible by num_heads"
    S, B, Din = src_sbi.shape

    # Fold batch into the matmul M dimension: (S, B, Din) -> (B*S, Din).
    src_flat = jnp.transpose(src_sbi, (1, 0, 2)).reshape(B * S, Din)
    # Positional encoding tiled over batch so the kernel stays 2-D throughout.
    pe_flat = jnp.tile(packed["pe"][:S], (B, 1))                # (B*S, D)

    kernel = functools.partial(
        _fused_transformer_kernel,
        batch=B, seq=S, num_heads=num_heads, mxu_dtype=MXU_DTYPE)

    out_flat = pl.pallas_call(
        kernel,
        out_shape=jax.ShapeDtypeStruct((B * S, 1), jnp.float32),
        compiler_params=pltpu.CompilerParams(
            vmem_limit_bytes=32 * 1024 * 1024),
    )(src_flat, pe_flat, packed["emb_w"], packed["emb_b"],
      packed["wqkv"], packed["bqkv"], packed["wo"], packed["bo"],
      packed["g1"], packed["be1"], packed["w1"], packed["b1"],
      packed["w2"], packed["b2"], packed["g2"], packed["be2"],
      packed["dec_w"], packed["dec_b"])

    # (B*S, 1) -> (S, B, 1)
    return jnp.transpose(out_flat.reshape(B, S, 1), (1, 0, 2))


# ------------------------------ parameters --------------------------------- #

def make_positional_encoding(max_len, d_model):
    position = jnp.arange(max_len, dtype=jnp.float32)[:, None]
    div_term = jnp.exp(jnp.arange(0, d_model, 2, dtype=jnp.float32)
                       * (-math.log(10000.0) / d_model))
    pe = jnp.zeros((max_len, d_model), dtype=jnp.float32)
    pe = pe.at[:, 0::2].set(jnp.sin(position * div_term))
    pe = pe.at[:, 1::2].set(jnp.cos(position * div_term))
    return pe


def init_params(key, input_dim, model_dim, num_layers, max_len=5000):
    """PyTorch-layout parameters (Linear weights are (out, in))."""
    d, ff = model_dim, model_dim * 4
    ks = iter(jax.random.split(key, 4 + 8 * num_layers))

    def w(shape):
        return 0.05 * jax.random.normal(next(ks), shape, dtype=jnp.float32)

    params = {
        "emb_w": w((d, input_dim)), "emb_b": w((d,)),
        "dec_w": w((1, d)), "dec_b": w((1,)),
        "pe": make_positional_encoding(max_len, d),
        "layers": [],
    }
    for _ in range(num_layers):
        params["layers"].append({
            "wqkv": w((3 * d, d)), "bqkv": w((3 * d,)),
            "wo": w((d, d)), "bo": w((d,)),
            "w1": w((ff, d)), "b1": w((ff,)),
            "w2": w((d, ff)), "b2": w((d,)),
            "g1": jnp.ones((d,), jnp.float32), "be1": jnp.zeros((d,), jnp.float32),
            "g2": jnp.ones((d,), jnp.float32), "be2": jnp.zeros((d,), jnp.float32),
        })
    return params


def _permute_qkv_columns(w_t, num_heads):
    """(rows, 3D) with columns ordered [q | k | v] -> columns grouped per head
    as [q_h | k_h | v_h], so the kernel needs one lane slice per head."""
    rows, three_d = w_t.shape
    d = three_d // 3
    dh = d // num_heads
    wq, wk, wv = w_t[:, :d], w_t[:, d:2 * d], w_t[:, 2 * d:]
    stacked = jnp.stack([wq.reshape(rows, num_heads, dh),
                         wk.reshape(rows, num_heads, dh),
                         wv.reshape(rows, num_heads, dh)], axis=2)
    return stacked.reshape(rows, three_d)


def pack_params(p, num_heads, mxu_dtype=MXU_DTYPE):
    """One-time conversion to the kernel layout: layer params stacked on a
    leading axis, matmul weights transposed to (in, out), QKV columns permuted
    per head, sqrt(model_dim) folded into the embedding, MXU weights cast to
    bf16; biases / LayerNorm / decoder stay f32 for the VPU."""
    L = len(p["layers"])
    d = p["emb_w"].shape[0]
    emb_scale = math.sqrt(d)
    stack = lambda n: jnp.stack([p["layers"][i][n] for i in range(L)])
    t = lambda x: jnp.swapaxes(x, -1, -2)
    row = lambda n: stack(n)[:, None, :]

    wqkv_t = t(stack("wqkv"))                                    # (L, D, 3D)
    wqkv_p = jnp.stack([_permute_qkv_columns(wqkv_t[i], num_heads)
                        for i in range(L)])
    bqkv_p = jnp.stack([_permute_qkv_columns(
        p["layers"][i]["bqkv"].reshape(1, -1), num_heads) for i in range(L)])

    return {
        "emb_w": (p["emb_w"].T * emb_scale).astype(mxu_dtype),   # (Din, D)
        "emb_b": (p["emb_b"] * emb_scale).reshape(1, -1),        # (1, D) f32
        "pe": p["pe"],
        "wqkv": wqkv_p.astype(mxu_dtype),                        # (L, D, 3D)
        "bqkv": bqkv_p,                                          # (L, 1, 3D)
        "wo": t(stack("wo")).astype(mxu_dtype),                  # (L, D, D)
        "bo": row("bo"),
        "g1": row("g1"), "be1": row("be1"),
        "w1": t(stack("w1")).astype(mxu_dtype),                  # (L, D, FF)
        "b1": row("b1"),
        "w2": t(stack("w2")).astype(mxu_dtype),                  # (L, FF, D)
        "b2": row("b2"),
        "g2": row("g2"), "be2": row("be2"),
        "dec_w": p["dec_w"].reshape(1, -1),                      # (1, D) f32
        "dec_b": p["dec_b"].reshape(1, 1),                       # (1, 1) f32
    }


# --------------------------------- main ------------------------------------ #

if __name__ == "__main__":
    SEQ, BATCH, INPUT_DIM = 8, 2, 4
    MODEL_DIM, NUM_HEADS, NUM_LAYERS = 32, 4, 2

    key = jax.random.PRNGKey(0)
    k_param, k_data = jax.random.split(key)

    params = init_params(k_param, INPUT_DIM, MODEL_DIM, NUM_LAYERS)
    packed = pack_params(params, NUM_HEADS)
    src = jax.random.normal(k_data, (SEQ, BATCH, INPUT_DIM), dtype=jnp.float32)

    fwd = jax.jit(functools.partial(transformer_forward,
                                    model_dim=MODEL_DIM, num_heads=NUM_HEADS))
    out = jax.block_until_ready(fwd(src, packed))

    assert out.shape == (SEQ, BATCH, 1), out.shape
    assert bool(jnp.all(jnp.isfinite(out)))
    print("KERNEL_OK")
</pallas_src>

<mosaic_0001>
module attributes {stable_mosaic.version = 11 : i64} {
  func.func @_fused_transformer_kernel(%arg0: memref<16x4xf32, #tpu.memory_space<vmem>>, %arg1: memref<16x32xf32, #tpu.memory_space<vmem>>, %arg2: memref<4x32xbf16, #tpu.memory_space<vmem>>, %arg3: memref<1x32xf32, #tpu.memory_space<vmem>>, %arg4: memref<2x32x96xbf16, #tpu.memory_space<vmem>>, %arg5: memref<2x1x96xf32, #tpu.memory_space<vmem>>, %arg6: memref<2x32x32xbf16, #tpu.memory_space<vmem>>, %arg7: memref<2x1x32xf32, #tpu.memory_space<vmem>>, %arg8: memref<2x1x32xf32, #tpu.memory_space<vmem>>, %arg9: memref<2x1x32xf32, #tpu.memory_space<vmem>>, %arg10: memref<2x32x128xbf16, #tpu.memory_space<vmem>>, %arg11: memref<2x1x128xf32, #tpu.memory_space<vmem>>, %arg12: memref<2x128x32xbf16, #tpu.memory_space<vmem>>, %arg13: memref<2x1x32xf32, #tpu.memory_space<vmem>>, %arg14: memref<2x1x32xf32, #tpu.memory_space<vmem>>, %arg15: memref<2x1x32xf32, #tpu.memory_space<vmem>>, %arg16: memref<1x32xf32, #tpu.memory_space<vmem>>, %arg17: memref<1x1xf32, #tpu.memory_space<vmem>>, %arg18: memref<16x1xf32, #tpu.memory_space<vmem>>) attributes {dimension_semantics = [], scalar_prefetch = 0 : i64, scratch_operands = 0 : i64, tpu.core_type = #tpu.core_type<tc>} {
    %c0 = arith.constant 0 : index
    %c0_0 = arith.constant 0 : index
    %0 = vector.load %arg0[%c0, %c0_0] : memref<16x4xf32, #tpu.memory_space<vmem>>, vector<16x4xf32>
    %c0_1 = arith.constant 0 : index
    %c0_2 = arith.constant 0 : index
    %1 = vector.load %arg2[%c0_1, %c0_2] : memref<4x32xbf16, #tpu.memory_space<vmem>>, vector<4x32xbf16>
    %2 = arith.truncf %0 : vector<16x4xf32> to vector<16x4xbf16>
    %cst = arith.constant dense<0.000000e+00> : vector<16x32xf32>
    %3 = tpu.matmul %2, %1, %cst {dimension_numbers = #tpu.dot_dimension_numbers<[1], [0], [0], [1], [0, 0, 1, 1], [], []>} : vector<16x4xbf16>, vector<4x32xbf16>, vector<16x32xf32> -> vector<16x32xf32>
    %c0_3 = arith.constant 0 : index
    %c0_4 = arith.constant 0 : index
    %4 = vector.load %arg3[%c0_3, %c0_4] : memref<1x32xf32, #tpu.memory_space<vmem>>, vector<1x32xf32>
    %5 = vector.broadcast %4 : vector<1x32xf32> to vector<16x32xf32>
    %6 = arith.addf %3, %5 : vector<16x32xf32>
    %c0_5 = arith.constant 0 : index
    %c0_6 = arith.constant 0 : index
    %7 = vector.load %arg1[%c0_5, %c0_6] : memref<16x32xf32, #tpu.memory_space<vmem>>, vector<16x32xf32>
    %8 = arith.addf %6, %7 : vector<16x32xf32>
    %c0_7 = arith.constant 0 : index
    %c0_8 = arith.constant 0 : index
    %c0_9 = arith.constant 0 : index
    %9 = vector.load %arg4[%c0_7, %c0_8, %c0_9] : memref<2x32x96xbf16, #tpu.memory_space<vmem>>, vector<1x32x96xbf16>
    %10 = vector.shape_cast %9 : vector<1x32x96xbf16> to vector<32x96xbf16>
    %11 = arith.truncf %8 : vector<16x32xf32> to vector<16x32xbf16>
    %cst_10 = arith.constant dense<0.000000e+00> : vector<16x96xf32>
    %12 = tpu.matmul %11, %10, %cst_10 {dimension_numbers = #tpu.dot_dimension_numbers<[1], [0], [0], [1], [0, 0, 1, 1], [], []>} : vector<16x32xbf16>, vector<32x96xbf16>, vector<16x96xf32> -> vector<16x96xf32>
    %c0_11 = arith.constant 0 : index
    %c0_12 = arith.constant 0 : index
    %c0_13 = arith.constant 0 : index
    %13 = vector.load %arg5[%c0_11, %c0_12, %c0_13] : memref<2x1x96xf32, #tpu.memory_space<vmem>>, vector<1x1x96xf32>
    %14 = vector.shape_cast %13 : vector<1x1x96xf32> to vector<1x96xf32>
    %15 = vector.broadcast %14 : vector<1x96xf32> to vector<16x96xf32>
    %16 = arith.addf %12, %15 : vector<16x96xf32>
    %17 = vector.shape_cast %16 : vector<16x96xf32> to vector<2x8x96xf32>
    %18 = vector.extract_strided_slice %17 {offsets = [0, 0, 0], sizes = [2, 8, 24], strides = [1, 1, 1]} : vector<2x8x96xf32> to vector<2x8x24xf32>
    %19 = vector.shape_cast %18 : vector<2x8x24xf32> to vector<1x2x8x24xf32>
    %20 = vector.extract_strided_slice %17 {offsets = [0, 0, 24], sizes = [2, 8, 24], strides = [1, 1, 1]} : vector<2x8x96xf32> to vector<2x8x24xf32>
    %21 = vector.shape_cast %20 : vector<2x8x24xf32> to vector<1x2x8x24xf32>
    %22 = vector.extract_strided_slice %17 {offsets = [0, 0, 48], sizes = [2, 8, 24], strides = [1, 1, 1]} : vector<2x8x96xf32> to vector<2x8x24xf32>
    %23 = vector.shape_cast %22 : vector<2x8x24xf32> to vector<1x2x8x24xf32>
    %24 = vector.extract_strided_slice %17 {offsets = [0, 0, 72], sizes = [2, 8, 24], strides = [1, 1, 1]} : vector<2x8x96xf32> to vector<2x8x24xf32>
    %25 = vector.shape_cast %24 : vector<2x8x24xf32> to vector<1x2x8x24xf32>
    %26 = tpu.concatenate %19, %21, %23, %25 in 0 : vector<1x2x8x24xf32>, vector<1x2x8x24xf32>, vector<1x2x8x24xf32>, vector<1x2x8x24xf32> -> vector<4x2x8x24xf32>
    %27 = vector.shape_cast %26 : vector<4x2x8x24xf32> to vector<8x8x24xf32>
    %28 = arith.truncf %27 : vector<8x8x24xf32> to vector<8x8x24xbf16>
    %29 = vector.extract_strided_slice %28 {offsets = [0, 0, 0], sizes = [8, 8, 8], strides = [1, 1, 1]} : vector<8x8x24xbf16> to vector<8x8x8xbf16>
    %30 = vector.extract_strided_slice %28 {offsets = [0, 0, 8], sizes = [8, 8, 8], strides = [1, 1, 1]} : vector<8x8x24xbf16> to vector<8x8x8xbf16>
    %31 = vector.extract_strided_slice %28 {offsets = [0, 0, 16], sizes = [8, 8, 8], strides = [1, 1, 1]} : vector<8x8x24xbf16> to vector<8x8x8xbf16>
    "tpu.trace_start"() <{level = 10 : i32, message = "hqd,hkd->hqk"}> : () -> ()
    %cst_14 = arith.constant dense<0.000000e+00> : vector<8x8x8xf32>
    %32 = tpu.matmul %29, %30, %cst_14 {dimension_numbers = #tpu.dot_dimension_numbers<[2], [2], [1], [1], [0, 0, 0, 1, 1, 1], [0], [0]>} : vector<8x8x8xbf16>, vector<8x8x8xbf16>, vector<8x8x8xf32> -> vector<8x8x8xf32>
    "tpu.trace_stop"() : () -> ()
    %cst_15 = arith.constant 0.353553385 : f32
    %33 = vector.broadcast %cst_15 : f32 to vector<8x8x8xf32>
    %34 = arith.mulf %32, %33 : vector<8x8x8xf32>
    %cst_16 = arith.constant dense<0xFF800000> : vector<8x8xf32>
    %35 = vector.multi_reduction <maximumf>, %34, %cst_16 [2] : vector<8x8x8xf32> to vector<8x8xf32>
    %36 = vector.shape_cast %35 : vector<8x8xf32> to vector<8x8x1xf32>
    %37 = vector.broadcast %36 : vector<8x8x1xf32> to vector<8x8x8xf32>
    %38 = arith.subf %34, %37 : vector<8x8x8xf32>
    %39 = math.exp %38 : vector<8x8x8xf32>
    %cst_17 = arith.constant dense<0.000000e+00> : vector<8x8xf32>
    %40 = vector.multi_reduction <add>, %39, %cst_17 [2] : vector<8x8x8xf32> to vector<8x8xf32>
    %41 = vector.shape_cast %40 : vector<8x8xf32> to vector<8x8x1xf32>
    %42 = tpu.reciprocal %41 {approx = true} : vector<8x8x1xf32> -> vector<8x8x1xf32>
    %43 = vector.broadcast %42 : vector<8x8x1xf32> to vector<8x8x8xf32>
    %44 = arith.mulf %39, %43 : vector<8x8x8xf32>
    %45 = arith.truncf %44 : vector<8x8x8xf32> to vector<8x8x8xbf16>
    "tpu.trace_start"() <{level = 10 : i32, message = "hqk,hkd->hqd"}> : () -> ()
    %cst_18 = arith.constant dense<0.000000e+00> : vector<8x8x8xf32>
    %46 = tpu.matmul %45, %31, %cst_18 {dimension_numbers = #tpu.dot_dimension_numbers<[2], [1], [1], [2], [0, 0, 0, 1, 1, 2], [0], [0]>} : vector<8x8x8xbf16>, vector<8x8x8xbf16>, vector<8x8x8xf32> -> vector<8x8x8xf32>
    "tpu.trace_stop"() : () -> ()
    %47 = vector.shape_cast %46 : vector<8x8x8xf32> to vector<4x2x8x8xf32>
    %48 = vector.extract_strided_slice %47 {offsets = [0, 0, 0, 0], sizes = [1, 2, 8, 8], strides = [1, 1, 1, 1]} : vector<4x2x8x8xf32> to vector<1x2x8x8xf32>
    %49 = vector.shape_cast %48 : vector<1x2x8x8xf32> to vector<2x8x8xf32>
    %50 = vector.extract_strided_slice %47 {offsets = [1, 0, 0, 0], sizes = [1, 2, 8, 8], strides = [1, 1, 1, 1]} : vector<4x2x8x8xf32> to vector<1x2x8x8xf32>
    %51 = vector.shape_cast %50 : vector<1x2x8x8xf32> to vector<2x8x8xf32>
    %52 = vector.extract_strided_slice %47 {offsets = [2, 0, 0, 0], sizes = [1, 2, 8, 8], strides = [1, 1, 1, 1]} : vector<4x2x8x8xf32> to vector<1x2x8x8xf32>
    %53 = vector.shape_cast %52 : vector<1x2x8x8xf32> to vector<2x8x8xf32>
    %54 = vector.extract_strided_slice %47 {offsets = [3, 0, 0, 0], sizes = [1, 2, 8, 8], strides = [1, 1, 1, 1]} : vector<4x2x8x8xf32> to vector<1x2x8x8xf32>
    %55 = vector.shape_cast %54 : vector<1x2x8x8xf32> to vector<2x8x8xf32>
    %56 = tpu.concatenate %49, %51, %53, %55 in 2 : vector<2x8x8xf32>, vector<2x8x8xf32>, vector<2x8x8xf32>, vector<2x8x8xf32> -> vector<2x8x32xf32>
    %57 = vector.shape_cast %56 : vector<2x8x32xf32> to vector<16x32xf32>
    %c0_19 = arith.constant 0 : index
    %c0_20 = arith.constant 0 : index
    %c0_21 = arith.constant 0 : index
    %58 = vector.load %arg6[%c0_19, %c0_20, %c0_21] : memref<2x32x32xbf16, #tpu.memory_space<vmem>>, vector<1x32x32xbf16>
    %59 = vector.shape_cast %58 : vector<1x32x32xbf16> to vector<32x32xbf16>
    %60 = arith.truncf %57 : vector<16x32xf32> to vector<16x32xbf16>
    %cst_22 = arith.constant dense<0.000000e+00> : vector<16x32xf32>
    %61 = tpu.matmul %60, %59, %cst_22 {dimension_numbers = #tpu.dot_dimension_numbers<[1], [0], [0], [1], [0, 0, 1, 1], [], []>} : vector<16x32xbf16>, vector<32x32xbf16>, vector<16x32xf32> -> vector<16x32xf32>
    %c0_23 = arith.constant 0 : index
    %c0_24 = arith.constant 0 : index
    %c0_25 = arith.constant 0 : index
    %62 = vector.load %arg7[%c0_23, %c0_24, %c0_25] : memref<2x1x32xf32, #tpu.memory_space<vmem>>, vector<1x1x32xf32>
    %63 = vector.shape_cast %62 : vector<1x1x32xf32> to vector<1x32xf32>
    %64 = vector.broadcast %63 : vector<1x32xf32> to vector<16x32xf32>
    %65 = arith.addf %61, %64 : vector<16x32xf32>
    %66 = arith.addf %8, %65 : vector<16x32xf32>
    %c0_26 = arith.constant 0 : index
    %c0_27 = arith.constant 0 : index
    %c0_28 = arith.constant 0 : index
    %67 = vector.load %arg8[%c0_26, %c0_27, %c0_28] : memref<2x1x32xf32, #tpu.memory_space<vmem>>, vector<1x1x32xf32>
    %68 = vector.shape_cast %67 : vector<1x1x32xf32> to vector<1x32xf32>
    %c0_29 = arith.constant 0 : index
    %c0_30 = arith.constant 0 : index
    %c0_31 = arith.constant 0 : index
    %69 = vector.load %arg9[%c0_29, %c0_30, %c0_31] : memref<2x1x32xf32, #tpu.memory_space<vmem>>, vector<1x1x32xf32>
    %70 = vector.shape_cast %69 : vector<1x1x32xf32> to vector<1x32xf32>
    %cst_32 = arith.constant dense<0.000000e+00> : vector<16xf32>
    %71 = vector.multi_reduction <add>, %66, %cst_32 [1] : vector<16x32xf32> to vector<16xf32>
    %72 = vector.shape_cast %71 : vector<16xf32> to vector<16x1xf32>
    %cst_33 = arith.constant 3.200000e+01 : f32
    %73 = vector.broadcast %cst_33 : f32 to vector<16x1xf32>
    %74 = arith.divf %72, %73 : vector<16x1xf32>
    %75 = vector.broadcast %74 : vector<16x1xf32> to vector<16x32xf32>
    %76 = arith.subf %66, %75 : vector<16x32xf32>
    %77 = arith.mulf %76, %76 : vector<16x32xf32>
    %cst_34 = arith.constant dense<0.000000e+00> : vector<16xf32>
    %78 = vector.multi_reduction <add>, %77, %cst_34 [1] : vector<16x32xf32> to vector<16xf32>
    %79 = vector.shape_cast %78 : vector<16xf32> to vector<16x1xf32>
    %cst_35 = arith.constant 3.200000e+01 : f32
    %80 = vector.broadcast %cst_35 : f32 to vector<16x1xf32>
    %81 = arith.divf %79, %80 : vector<16x1xf32>
    %82 = vector.broadcast %74 : vector<16x1xf32> to vector<16x32xf32>
    %83 = arith.subf %66, %82 : vector<16x32xf32>
    %cst_36 = arith.constant 9.99999974E-6 : f32
    %84 = vector.broadcast %cst_36 : f32 to vector<16x1xf32>
    %85 = arith.addf %81, %84 : vector<16x1xf32>
    %86 = math.rsqrt %85 : vector<16x1xf32>
    %87 = vector.broadcast %86 : vector<16x1xf32> to vector<16x32xf32>
    %88 = arith.mulf %83, %87 : vector<16x32xf32>
    %89 = vector.broadcast %68 : vector<1x32xf32> to vector<16x32xf32>
    %90 = arith.mulf %88, %89 : vector<16x32xf32>
    %91 = vector.broadcast %70 : vector<1x32xf32> to vector<16x32xf32>
    %92 = arith.addf %90, %91 : vector<16x32xf32>
    %c0_37 = arith.constant 0 : index
    %c0_38 = arith.constant 0 : index
    %c0_39 = arith.constant 0 : index
    %93 = vector.load %arg10[%c0_37, %c0_38, %c0_39] : memref<2x32x128xbf16, #tpu.memory_space<vmem>>, vector<1x32x128xbf16>
    %94 = vector.shape_cast %93 : vector<1x32x128xbf16> to vector<32x128xbf16>
    %95 = arith.truncf %92 : vector<16x32xf32> to vector<16x32xbf16>
    %cst_40 = arith.constant dense<0.000000e+00> : vector<16x128xf32>
    %96 = tpu.matmul %95, %94, %cst_40 {dimension_numbers = #tpu.dot_dimension_numbers<[1], [0], [0], [1], [0, 0, 1, 1], [], []>} : vector<16x32xbf16>, vector<32x128xbf16>, vector<16x128xf32> -> vector<16x128xf32>
    %c0_41 = arith.constant 0 : index
    %c0_42 = arith.constant 0 : index
    %c0_43 = arith.constant 0 : index
    %97 = vector.load %arg11[%c0_41, %c0_42, %c0_43] : memref<2x1x128xf32, #tpu.memory_space<vmem>>, vector<1x1x128xf32>
    %98 = vector.shape_cast %97 : vector<1x1x128xf32> to vector<1x128xf32>
    %99 = vector.broadcast %98 : vector<1x128xf32> to vector<16x128xf32>
    %100 = arith.addf %96, %99 : vector<16x128xf32>
    %cst_44 = arith.constant 0.000000e+00 : f32
    %101 = vector.broadcast %cst_44 : f32 to vector<16x128xf32>
    %102 = arith.maximumf %100, %101 : vector<16x128xf32>
    %c0_45 = arith.constant 0 : index
    %c0_46 = arith.constant 0 : index
    %c0_47 = arith.constant 0 : index
    %103 = vector.load %arg12[%c0_45, %c0_46, %c0_47] : memref<2x128x32xbf16, #tpu.memory_space<vmem>>, vector<1x128x32xbf16>
    %104 = vector.shape_cast %103 : vector<1x128x32xbf16> to vector<128x32xbf16>
    %105 = arith.truncf %102 : vector<16x128xf32> to vector<16x128xbf16>
    %cst_48 = arith.constant dense<0.000000e+00> : vector<16x32xf32>
    %106 = tpu.matmul %105, %104, %cst_48 {dimension_numbers = #tpu.dot_dimension_numbers<[1], [0], [0], [1], [0, 0, 1, 1], [], []>} : vector<16x128xbf16>, vector<128x32xbf16>, vector<16x32xf32> -> vector<16x32xf32>
    %c0_49 = arith.constant 0 : index
    %c0_50 = arith.constant 0 : index
    %c0_51 = arith.constant 0 : index
    %107 = vector.load %arg13[%c0_49, %c0_50, %c0_51] : memref<2x1x32xf32, #tpu.memory_space<vmem>>, vector<1x1x32xf32>
    %108 = vector.shape_cast %107 : vector<1x1x32xf32> to vector<1x32xf32>
    %109 = vector.broadcast %108 : vector<1x32xf32> to vector<16x32xf32>
    %110 = arith.addf %106, %109 : vector<16x32xf32>
    %111 = arith.addf %92, %110 : vector<16x32xf32>
    %c0_52 = arith.constant 0 : index
    %c0_53 = arith.constant 0 : index
    %c0_54 = arith.constant 0 : index
    %112 = vector.load %arg14[%c0_52, %c0_53, %c0_54] : memref<2x1x32xf32, #tpu.memory_space<vmem>>, vector<1x1x32xf32>
    %113 = vector.shape_cast %112 : vector<1x1x32xf32> to vector<1x32xf32>
    %c0_55 = arith.constant 0 : index
    %c0_56 = arith.constant 0 : index
    %c0_57 = arith.constant 0 : index
    %114 = vector.load %arg15[%c0_55, %c0_56, %c0_57] : memref<2x1x32xf32, #tpu.memory_space<vmem>>, vector<1x1x32xf32>
    %115 = vector.shape_cast %114 : vector<1x1x32xf32> to vector<1x32xf32>
    %cst_58 = arith.constant dense<0.000000e+00> : vector<16xf32>
    %116 = vector.multi_reduction <add>, %111, %cst_58 [1] : vector<16x32xf32> to vector<16xf32>
    %117 = vector.shape_cast %116 : vector<16xf32> to vector<16x1xf32>
    %cst_59 = arith.constant 3.200000e+01 : f32
    %118 = vector.broadcast %cst_59 : f32 to vector<16x1xf32>
    %119 = arith.divf %117, %118 : vector<16x1xf32>
    %120 = vector.broadcast %119 : vector<16x1xf32> to vector<16x32xf32>
    %121 = arith.subf %111, %120 : vector<16x32xf32>
    %122 = arith.mulf %121, %121 : vector<16x32xf32>
    %cst_60 = arith.constant dense<0.000000e+00> : vector<16xf32>
    %123 = vector.multi_reduction <add>, %122, %cst_60 [1] : vector<16x32xf32> to vector<16xf32>
    %124 = vector.shape_cast %123 : vector<16xf32> to vector<16x1xf32>
    %cst_61 = arith.constant 3.200000e+01 : f32
    %125 = vector.broadcast %cst_61 : f32 to vector<16x1xf32>
    %126 = arith.divf %124, %125 : vector<16x1xf32>
    %127 = vector.broadcast %119 : vector<16x1xf32> to vector<16x32xf32>
    %128 = arith.subf %111, %127 : vector<16x32xf32>
    %cst_62 = arith.constant 9.99999974E-6 : f32
    %129 = vector.broadcast %cst_62 : f32 to vector<16x1xf32>
    %130 = arith.addf %126, %129 : vector<16x1xf32>
    %131 = math.rsqrt %130 : vector<16x1xf32>
    %132 = vector.broadcast %131 : vector<16x1xf32> to vector<16x32xf32>
    %133 = arith.mulf %128, %132 : vector<16x32xf32>
    %134 = vector.broadcast %113 : vector<1x32xf32> to vector<16x32xf32>
    %135 = arith.mulf %133, %134 : vector<16x32xf32>
    %136 = vector.broadcast %115 : vector<1x32xf32> to vector<16x32xf32>
    %137 = arith.addf %135, %136 : vector<16x32xf32>
    %c1 = arith.constant 1 : index
    %c0_63 = arith.constant 0 : index
    %c0_64 = arith.constant 0 : index
    %138 = vector.load %arg4[%c1, %c0_63, %c0_64] : memref<2x32x96xbf16, #tpu.memory_space<vmem>>, vector<1x32x96xbf16>
    %139 = vector.shape_cast %138 : vector<1x32x96xbf16> to vector<32x96xbf16>
    %140 = arith.truncf %137 : vector<16x32xf32> to vector<16x32xbf16>
    %cst_65 = arith.constant dense<0.000000e+00> : vector<16x96xf32>
    %141 = tpu.matmul %140, %139, %cst_65 {dimension_numbers = #tpu.dot_dimension_numbers<[1], [0], [0], [1], [0, 0, 1, 1], [], []>} : vector<16x32xbf16>, vector<32x96xbf16>, vector<16x96xf32> -> vector<16x96xf32>
    %c1_66 = arith.constant 1 : index
    %c0_67 = arith.constant 0 : index
    %c0_68 = arith.constant 0 : index
    %142 = vector.load %arg5[%c1_66, %c0_67, %c0_68] : memref<2x1x96xf32, #tpu.memory_space<vmem>>, vector<1x1x96xf32>
    %143 = vector.shape_cast %142 : vector<1x1x96xf32> to vector<1x96xf32>
    %144 = vector.broadcast %143 : vector<1x96xf32> to vector<16x96xf32>
    %145 = arith.addf %141, %144 : vector<16x96xf32>
    %146 = vector.shape_cast %145 : vector<16x96xf32> to vector<2x8x96xf32>
    %147 = vector.extract_strided_slice %146 {offsets = [0, 0, 0], sizes = [2, 8, 24], strides = [1, 1, 1]} : vector<2x8x96xf32> to vector<2x8x24xf32>
    %148 = vector.shape_cast %147 : vector<2x8x24xf32> to vector<1x2x8x24xf32>
    %149 = vector.extract_strided_slice %146 {offsets = [0, 0, 24], sizes = [2, 8, 24], strides = [1, 1, 1]} : vector<2x8x96xf32> to vector<2x8x24xf32>
    %150 = vector.shape_cast %149 : vector<2x8x24xf32> to vector<1x2x8x24xf32>
    %151 = vector.extract_strided_slice %146 {offsets = [0, 0, 48], sizes = [2, 8, 24], strides = [1, 1, 1]} : vector<2x8x96xf32> to vector<2x8x24xf32>
    %152 = vector.shape_cast %151 : vector<2x8x24xf32> to vector<1x2x8x24xf32>
    %153 = vector.extract_strided_slice %146 {offsets = [0, 0, 72], sizes = [2, 8, 24], strides = [1, 1, 1]} : vector<2x8x96xf32> to vector<2x8x24xf32>
    %154 = vector.shape_cast %153 : vector<2x8x24xf32> to vector<1x2x8x24xf32>
    %155 = tpu.concatenate %148, %150, %152, %154 in 0 : vector<1x2x8x24xf32>, vector<1x2x8x24xf32>, vector<1x2x8x24xf32>, vector<1x2x8x24xf32> -> vector<4x2x8x24xf32>
    %156 = vector.shape_cast %155 : vector<4x2x8x24xf32> to vector<8x8x24xf32>
    %157 = arith.truncf %156 : vector<8x8x24xf32> to vector<8x8x24xbf16>
    %158 = vector.extract_strided_slice %157 {offsets = [0, 0, 0], sizes = [8, 8, 8], strides = [1, 1, 1]} : vector<8x8x24xbf16> to vector<8x8x8xbf16>
    %159 = vector.extract_strided_slice %157 {offsets = [0, 0, 8], sizes = [8, 8, 8], strides = [1, 1, 1]} : vector<8x8x24xbf16> to vector<8x8x8xbf16>
    %160 = vector.extract_strided_slice %157 {offsets = [0, 0, 16], sizes = [8, 8, 8], strides = [1, 1, 1]} : vector<8x8x24xbf16> to vector<8x8x8xbf16>
    "tpu.trace_start"() <{level = 10 : i32, message = "hqd,hkd->hqk"}> : () -> ()
    %cst_69 = arith.constant dense<0.000000e+00> : vector<8x8x8xf32>
    %161 = tpu.matmul %158, %159, %cst_69 {dimension_numbers = #tpu.dot_dimension_numbers<[2], [2], [1], [1], [0, 0, 0, 1, 1, 1], [0], [0]>} : vector<8x8x8xbf16>, vector<8x8x8xbf16>, vector<8x8x8xf32> -> vector<8x8x8xf32>
    "tpu.trace_stop"() : () -> ()
    %cst_70 = arith.constant 0.353553385 : f32
    %162 = vector.broadcast %cst_70 : f32 to vector<8x8x8xf32>
    %163 = arith.mulf %161, %162 : vector<8x8x8xf32>
    %cst_71 = arith.constant dense<0xFF800000> : vector<8x8xf32>
    %164 = vector.multi_reduction <maximumf>, %163, %cst_71 [2] : vector<8x8x8xf32> to vector<8x8xf32>
    %165 = vector.shape_cast %164 : vector<8x8xf32> to vector<8x8x1xf32>
    %166 = vector.broadcast %165 : vector<8x8x1xf32> to vector<8x8x8xf32>
    %167 = arith.subf %163, %166 : vector<8x8x8xf32>
    %168 = math.exp %167 : vector<8x8x8xf32>
    %cst_72 = arith.constant dense<0.000000e+00> : vector<8x8xf32>
    %169 = vector.multi_reduction <add>, %168, %cst_72 [2] : vector<8x8x8xf32> to vector<8x8xf32>
    %170 = vector.shape_cast %169 : vector<8x8xf32> to vector<8x8x1xf32>
    %171 = tpu.reciprocal %170 {approx = true} : vector<8x8x1xf32> -> vector<8x8x1xf32>
    %172 = vector.broadcast %171 : vector<8x8x1xf32> to vector<8x8x8xf32>
    %173 = arith.mulf %168, %172 : vector<8x8x8xf32>
    %174 = arith.truncf %173 : vector<8x8x8xf32> to vector<8x8x8xbf16>
    "tpu.trace_start"() <{level = 10 : i32, message = "hqk,hkd->hqd"}> : () -> ()
    %cst_73 = arith.constant dense<0.000000e+00> : vector<8x8x8xf32>
    %175 = tpu.matmul %174, %160, %cst_73 {dimension_numbers = #tpu.dot_dimension_numbers<[2], [1], [1], [2], [0, 0, 0, 1, 1, 2], [0], [0]>} : vector<8x8x8xbf16>, vector<8x8x8xbf16>, vector<8x8x8xf32> -> vector<8x8x8xf32>
    "tpu.trace_stop"() : () -> ()
    %176 = vector.shape_cast %175 : vector<8x8x8xf32> to vector<4x2x8x8xf32>
    %177 = vector.extract_strided_slice %176 {offsets = [0, 0, 0, 0], sizes = [1, 2, 8, 8], strides = [1, 1, 1, 1]} : vector<4x2x8x8xf32> to vector<1x2x8x8xf32>
    %178 = vector.shape_cast %177 : vector<1x2x8x8xf32> to vector<2x8x8xf32>
    %179 = vector.extract_strided_slice %176 {offsets = [1, 0, 0, 0], sizes = [1, 2, 8, 8], strides = [1, 1, 1, 1]} : vector<4x2x8x8xf32> to vector<1x2x8x8xf32>
    %180 = vector.shape_cast %179 : vector<1x2x8x8xf32> to vector<2x8x8xf32>
    %181 = vector.extract_strided_slice %176 {offsets = [2, 0, 0, 0], sizes = [1, 2, 8, 8], strides = [1, 1, 1, 1]} : vector<4x2x8x8xf32> to vector<1x2x8x8xf32>
    %182 = vector.shape_cast %181 : vector<1x2x8x8xf32> to vector<2x8x8xf32>
    %183 = vector.extract_strided_slice %176 {offsets = [3, 0, 0, 0], sizes = [1, 2, 8, 8], strides = [1, 1, 1, 1]} : vector<4x2x8x8xf32> to vector<1x2x8x8xf32>
    %184 = vector.shape_cast %183 : vector<1x2x8x8xf32> to vector<2x8x8xf32>
    %185 = tpu.concatenate %178, %180, %182, %184 in 2 : vector<2x8x8xf32>, vector<2x8x8xf32>, vector<2x8x8xf32>, vector<2x8x8xf32> -> vector<2x8x32xf32>
    %186 = vector.shape_cast %185 : vector<2x8x32xf32> to vector<16x32xf32>
    %c1_74 = arith.constant 1 : index
    %c0_75 = arith.constant 0 : index
    %c0_76 = arith.constant 0 : index
    %187 = vector.load %arg6[%c1_74, %c0_75, %c0_76] : memref<2x32x32xbf16, #tpu.memory_space<vmem>>, vector<1x32x32xbf16>
    %188 = vector.shape_cast %187 : vector<1x32x32xbf16> to vector<32x32xbf16>
    %189 = arith.truncf %186 : vector<16x32xf32> to vector<16x32xbf16>
    %cst_77 = arith.constant dense<0.000000e+00> : vector<16x32xf32>
    %190 = tpu.matmul %189, %188, %cst_77 {dimension_numbers = #tpu.dot_dimension_numbers<[1], [0], [0], [1], [0, 0, 1, 1], [], []>} : vector<16x32xbf16>, vector<32x32xbf16>, vector<16x32xf32> -> vector<16x32xf32>
    %c1_78 = arith.constant 1 : index
    %c0_79 = arith.constant 0 : index
    %c0_80 = arith.constant 0 : index
    %191 = vector.load %arg7[%c1_78, %c0_79, %c0_80] : memref<2x1x32xf32, #tpu.memory_space<vmem>>, vector<1x1x32xf32>
    %192 = vector.shape_cast %191 : vector<1x1x32xf32> to vector<1x32xf32>
    %193 = vector.broadcast %192 : vector<1x32xf32> to vector<16x32xf32>
    %194 = arith.addf %190, %193 : vector<16x32xf32>
    %195 = arith.addf %137, %194 : vector<16x32xf32>
    %c1_81 = arith.constant 1 : index
    %c0_82 = arith.constant 0 : index
    %c0_83 = arith.constant 0 : index
    %196 = vector.load %arg8[%c1_81, %c0_82, %c0_83] : memref<2x1x32xf32, #tpu.memory_space<vmem>>, vector<1x1x32xf32>
    %197 = vector.shape_cast %196 : vector<1x1x32xf32> to vector<1x32xf32>
    %c1_84 = arith.constant 1 : index
    %c0_85 = arith.constant 0 : index
    %c0_86 = arith.constant 0 : index
    %198 = vector.load %arg9[%c1_84, %c0_85, %c0_86] : memref<2x1x32xf32, #tpu.memory_space<vmem>>, vector<1x1x32xf32>
    %199 = vector.shape_cast %198 : vector<1x1x32xf32> to vector<1x32xf32>
    %cst_87 = arith.constant dense<0.000000e+00> : vector<16xf32>
    %200 = vector.multi_reduction <add>, %195, %cst_87 [1] : vector<16x32xf32> to vector<16xf32>
    %201 = vector.shape_cast %200 : vector<16xf32> to vector<16x1xf32>
    %cst_88 = arith.constant 3.200000e+01 : f32
    %202 = vector.broadcast %cst_88 : f32 to vector<16x1xf32>
    %203 = arith.divf %201, %202 : vector<16x1xf32>
    %204 = vector.broadcast %203 : vector<16x1xf32> to vector<16x32xf32>
    %205 = arith.subf %195, %204 : vector<16x32xf32>
    %206 = arith.mulf %205, %205 : vector<16x32xf32>
    %cst_89 = arith.constant dense<0.000000e+00> : vector<16xf32>
    %207 = vector.multi_reduction <add>, %206, %cst_89 [1] : vector<16x32xf32> to vector<16xf32>
    %208 = vector.shape_cast %207 : vector<16xf32> to vector<16x1xf32>
    %cst_90 = arith.constant 3.200000e+01 : f32
    %209 = vector.broadcast %cst_90 : f32 to vector<16x1xf32>
    %210 = arith.divf %208, %209 : vector<16x1xf32>
    %211 = vector.broadcast %203 : vector<16x1xf32> to vector<16x32xf32>
    %212 = arith.subf %195, %211 : vector<16x32xf32>
    %cst_91 = arith.constant 9.99999974E-6 : f32
    %213 = vector.broadcast %cst_91 : f32 to vector<16x1xf32>
    %214 = arith.addf %210, %213 : vector<16x1xf32>
    %215 = math.rsqrt %214 : vector<16x1xf32>
    %216 = vector.broadcast %215 : vector<16x1xf32> to vector<16x32xf32>
    %217 = arith.mulf %212, %216 : vector<16x32xf32>
    %218 = vector.broadcast %197 : vector<1x32xf32> to vector<16x32xf32>
    %219 = arith.mulf %217, %218 : vector<16x32xf32>
    %220 = vector.broadcast %199 : vector<1x32xf32> to vector<16x32xf32>
    %221 = arith.addf %219, %220 : vector<16x32xf32>
    %c1_92 = arith.constant 1 : index
    %c0_93 = arith.constant 0 : index
    %c0_94 = arith.constant 0 : index
    %222 = vector.load %arg10[%c1_92, %c0_93, %c0_94] : memref<2x32x128xbf16, #tpu.memory_space<vmem>>, vector<1x32x128xbf16>
    %223 = vector.shape_cast %222 : vector<1x32x128xbf16> to vector<32x128xbf16>
    %224 = arith.truncf %221 : vector<16x32xf32> to vector<16x32xbf16>
    %cst_95 = arith.constant dense<0.000000e+00> : vector<16x128xf32>
    %225 = tpu.matmul %224, %223, %cst_95 {dimension_numbers = #tpu.dot_dimension_numbers<[1], [0], [0], [1], [0, 0, 1, 1], [], []>} : vector<16x32xbf16>, vector<32x128xbf16>, vector<16x128xf32> -> vector<16x128xf32>
    %c1_96 = arith.constant 1 : index
    %c0_97 = arith.constant 0 : index
    %c0_98 = arith.constant 0 : index
    %226 = vector.load %arg11[%c1_96, %c0_97, %c0_98] : memref<2x1x128xf32, #tpu.memory_space<vmem>>, vector<1x1x128xf32>
    %227 = vector.shape_cast %226 : vector<1x1x128xf32> to vector<1x128xf32>
    %228 = vector.broadcast %227 : vector<1x128xf32> to vector<16x128xf32>
    %229 = arith.addf %225, %228 : vector<16x128xf32>
    %cst_99 = arith.constant 0.000000e+00 : f32
    %230 = vector.broadcast %cst_99 : f32 to vector<16x128xf32>
    %231 = arith.maximumf %229, %230 : vector<16x128xf32>
    %c1_100 = arith.constant 1 : index
    %c0_101 = arith.constant 0 : index
    %c0_102 = arith.constant 0 : index
    %232 = vector.load %arg12[%c1_100, %c0_101, %c0_102] : memref<2x128x32xbf16, #tpu.memory_space<vmem>>, vector<1x128x32xbf16>
    %233 = vector.shape_cast %232 : vector<1x128x32xbf16> to vector<128x32xbf16>
    %234 = arith.truncf %231 : vector<16x128xf32> to vector<16x128xbf16>
    %cst_103 = arith.constant dense<0.000000e+00> : vector<16x32xf32>
    %235 = tpu.matmul %234, %233, %cst_103 {dimension_numbers = #tpu.dot_dimension_numbers<[1], [0], [0], [1], [0, 0, 1, 1], [], []>} : vector<16x128xbf16>, vector<128x32xbf16>, vector<16x32xf32> -> vector<16x32xf32>
    %c1_104 = arith.constant 1 : index
    %c0_105 = arith.constant 0 : index
    %c0_106 = arith.constant 0 : index
    %236 = vector.load %arg13[%c1_104, %c0_105, %c0_106] : memref<2x1x32xf32, #tpu.memory_space<vmem>>, vector<1x1x32xf32>
    %237 = vector.shape_cast %236 : vector<1x1x32xf32> to vector<1x32xf32>
    %238 = vector.broadcast %237 : vector<1x32xf32> to vector<16x32xf32>
    %239 = arith.addf %235, %238 : vector<16x32xf32>
    %240 = arith.addf %221, %239 : vector<16x32xf32>
    %c1_107 = arith.constant 1 : index
    %c0_108 = arith.constant 0 : index
    %c0_109 = arith.constant 0 : index
    %241 = vector.load %arg14[%c1_107, %c0_108, %c0_109] : memref<2x1x32xf32, #tpu.memory_space<vmem>>, vector<1x1x32xf32>
    %242 = vector.shape_cast %241 : vector<1x1x32xf32> to vector<1x32xf32>
    %c1_110 = arith.constant 1 : index
    %c0_111 = arith.constant 0 : index
    %c0_112 = arith.constant 0 : index
    %243 = vector.load %arg15[%c1_110, %c0_111, %c0_112] : memref<2x1x32xf32, #tpu.memory_space<vmem>>, vector<1x1x32xf32>
    %244 = vector.shape_cast %243 : vector<1x1x32xf32> to vector<1x32xf32>
    %cst_113 = arith.constant dense<0.000000e+00> : vector<16xf32>
    %245 = vector.multi_reduction <add>, %240, %cst_113 [1] : vector<16x32xf32> to vector<16xf32>
    %246 = vector.shape_cast %245 : vector<16xf32> to vector<16x1xf32>
    %cst_114 = arith.constant 3.200000e+01 : f32
    %247 = vector.broadcast %cst_114 : f32 to vector<16x1xf32>
    %248 = arith.divf %246, %247 : vector<16x1xf32>
    %249 = vector.broadcast %248 : vector<16x1xf32> to vector<16x32xf32>
    %250 = arith.subf %240, %249 : vector<16x32xf32>
    %251 = arith.mulf %250, %250 : vector<16x32xf32>
    %cst_115 = arith.constant dense<0.000000e+00> : vector<16xf32>
    %252 = vector.multi_reduction <add>, %251, %cst_115 [1] : vector<16x32xf32> to vector<16xf32>
    %253 = vector.shape_cast %252 : vector<16xf32> to vector<16x1xf32>
    %cst_116 = arith.constant 3.200000e+01 : f32
    %254 = vector.broadcast %cst_116 : f32 to vector<16x1xf32>
    %255 = arith.divf %253, %254 : vector<16x1xf32>
    %256 = vector.broadcast %248 : vector<16x1xf32> to vector<16x32xf32>
    %257 = arith.subf %240, %256 : vector<16x32xf32>
    %cst_117 = arith.constant 9.99999974E-6 : f32
    %258 = vector.broadcast %cst_117 : f32 to vector<16x1xf32>
    %259 = arith.addf %255, %258 : vector<16x1xf32>
    %260 = math.rsqrt %259 : vector<16x1xf32>
    %261 = vector.broadcast %260 : vector<16x1xf32> to vector<16x32xf32>
    %262 = arith.mulf %257, %261 : vector<16x32xf32>
    %263 = vector.broadcast %242 : vector<1x32xf32> to vector<16x32xf32>
    %264 = arith.mulf %262, %263 : vector<16x32xf32>
    %265 = vector.broadcast %244 : vector<1x32xf32> to vector<16x32xf32>
    %266 = arith.addf %264, %265 : vector<16x32xf32>
    %c0_118 = arith.constant 0 : index
    %c0_119 = arith.constant 0 : index
    %267 = vector.load %arg16[%c0_118, %c0_119] : memref<1x32xf32, #tpu.memory_space<vmem>>, vector<1x32xf32>
    %268 = vector.broadcast %267 : vector<1x32xf32> to vector<16x32xf32>
    %269 = arith.mulf %266, %268 : vector<16x32xf32>
    %cst_120 = arith.constant dense<0.000000e+00> : vector<16xf32>
    %270 = vector.multi_reduction <add>, %269, %cst_120 [1] : vector<16x32xf32> to vector<16xf32>
    %271 = vector.shape_cast %270 : vector<16xf32> to vector<16x1xf32>
    %c0_121 = arith.constant 0 : index
    %c0_122 = arith.constant 0 : index
    %272 = vector.load %arg17[%c0_121, %c0_122] : memref<1x1xf32, #tpu.memory_space<vmem>>, vector<1x1xf32>
    %273 = vector.broadcast %272 : vector<1x1xf32> to vector<16x1xf32>
    %274 = arith.addf %271, %273 : vector<16x1xf32>
    %c0_123 = arith.constant 0 : index
    %c0_124 = arith.constant 0 : index
    %275 = vector.load %arg18[%c0_123, %c0_124] : memref<16x1xf32, #tpu.memory_space<vmem>>, vector<16x1xf32>
    tpu.vector_store %arg18[%c0_123, %c0_124], %274 {strides = array<i32>} : memref<16x1xf32, #tpu.memory_space<vmem>>, vector<16x1xf32>,
    return
  }
}

</mosaic_0001>

<bundles_post_ra>
// kernel: transformer_forward.1
= control target key start
LH: loop header
LB: loop body
LE: loop exit
PB: predicated region body
PF: predicated region fallthrough
CT: control target
= control target key end

     0   :  { %vm77_vm0 = vcmask 1041408   ;;  %v3561_v0 = vmov 0.0   ;;  %vm3562_vm1 = vmmov 0   ;;  %vm73_vm2 = vcmask 31744   ;;  %s3566_s20 = smov 80   ;;  %s3567_s21 = smov 112   ;;  %s4287_s2 = inlined_call_operand.vmem [shape: bf16[4,32], index: 2, kind: input, shape index: {}]   ;;  %s4288_s0 = inlined_call_operand.vmem [shape: f32[16,4], index: 0, kind: input, shape index: {}]   ;;  %s4289_s4 = inlined_call_operand.vmem [shape: bf16[2,32,96], index: 4, kind: input, shape index: {}]   ;;  %s4290_s3 = inlined_call_operand.vmem [shape: f32[1,32], index: 3, kind: input, shape index: {}]   ;;  %s4291_s1 = inlined_call_operand.vmem [shape: f32[16,32], index: 1, kind: input, shape index: {}]   ;;  %s4292_s5 = inlined_call_operand.vmem [shape: f32[2,1,96], index: 5, kind: input, shape index: {}]   ;;  %s4293_s6 = inlined_call_operand.vmem [shape: bf16[2,32,32], index: 6, kind: input, shape index: {}]   ;;  %s4294_s7 = inlined_call_operand.vmem [shape: f32[2,1,32], index: 7, kind: input, shape index: {}]   ;;  %s4295_s10 = inlined_call_operand.vmem [shape: bf16[2,32,128], index: 10, kind: input, shape index: {}]   ;;  %s4296_s12 = inlined_call_operand.vmem [shape: bf16[2,128,32], index: 12, kind: input, shape index: {}]   ;;  %s4297_s8 = inlined_call_operand.vmem [shape: f32[2,1,32], index: 8, kind: input, shape index: {}]   ;;  %s4298_s9 = inlined_call_operand.vmem [shape: f32[2,1,32], index: 9, kind: input, shape index: {}]   ;;  %s4299_s11 = inlined_call_operand.vmem [shape: f32[2,1,128], index: 11, kind: input, shape index: {}]   ;;  %s4300_s13 = inlined_call_operand.vmem [shape: f32[2,1,32], index: 13, kind: input, shape index: {}]   ;;  %s4301_s14 = inlined_call_operand.vmem [shape: f32[2,1,32], index: 14, kind: input, shape index: {}]   ;;  %s4302_s15 = inlined_call_operand.vmem [shape: f32[2,1,32], index: 15, kind: input, shape index: {}]   ;;  %s4303_s17 = inlined_call_operand.<no memory space> [shape: f32[1,1], index: 17, kind: input, shape index: {}]   ;;  %s4304_s16 = inlined_call_operand.vmem [shape: f32[1,32], index: 16, kind: input, shape index: {}]   ;;  %s4305_s18 = inlined_call_operand.vmem [shape: f32[16,1], index: 18, kind: output, shape index: {}]  }
   0x1   :  { %4308 = sst [smem:[#allocation3_spill]] %s4287_s2  ;;  %3097 = vmatprep.subr.bf16.mxu0 %v3561_v0  ;;  %3099 = vmatprep.mubr.msk.bf16.mxu0 %vm3562_vm1, %v3561_v0  ;;  %v2873_v8 = vld [vmem:[%s4290_s3] ss:$0 sm:$0xff]  ;;  %v123_v14 = vld [vmem:[%s4291_s1 + $0x8] sm:$0xff]  ;;  %vm150_vm3 = vcmask 261120   ;;  %vm226_vm4 = vcmask 64512  }
   0x2   :  { %4309 = sst [smem:[#allocation4_spill]] %s4288_s0  ;;  %s4311_s29 = sld [smem:[#allocation3_spill]]  ;;  %3129 = vmatprep.subr.bf16.mxu1 %v3561_v0  ;;  %3131 = vmatprep.mubr.msk.bf16.mxu1 %vm3562_vm1, %v3561_v0  ;;  %v122_v12 = vld [vmem:[%s4291_s1] sm:$0xff]  ;;  %vm725_vm5 = vcmask 1043456   ;;  %vm1131_vm6 = vcmask 130048   ;;  %vm1134_vm7 = vcmask 195584  }
   0x3   :  { %4310 = sst [smem:[#allocation5_spill]] %s4289_s4  ;;  %s4312_s19 = sld [smem:[#allocation4_spill]]  ;;  %v2875_v20 = vld [vmem:[%s4292_s5] ss:$0 sm:$0xff]  ;;  %vm2866_vm8 = vcmask 7168  }
   0x4   :  { %s4313_s4 = sld [smem:[#allocation5_spill]]  ;;  %s3563_s1 = smov 56  }
   0x5   :  { %s3565_s0 = smov 120   ;;  %s3568_s22 = smov 8  }
   0x6   :  { %s3569_s27 = smov 16   ;;  %s3570_s28 = smov 24  }
   0x8   :  { %v64_v1 = vld [vmem:[%s4311_s29] sm:$0x3] }
   0x9   :  { %v62_v2 = vld [vmem:[%s4312_s19] sm:$0xff]  ;;  %v63_v3 = vld [vmem:[%s4312_s19 + $0x8] sm:$0xff]  ;;  %v79_v4 = vsel %vm77_vm0, %v64_v1, 0  ;;  %s3564_s19 = smov 104  }
   0xa   :  { %v65_v5 = vpack.c.bf16 %v63_v3, %v62_v2  ;;  %3098 = vmatpush3.bf16.msra.mxu0 %v79_v4  ;;  %v3453_v6 = vld [vmem:[%s4313_s4] sm:$0xff]   ;;  %v3454_v7 = vld [vmem:[%s4313_s4 + $0x8] sm:$0xff]  }
   0xb   :  { %3103 = vmatprep.subr.bf16.mxu0 %v3561_v0 }
   0xd   :  { %3100 = vmatmul.mubr.msk.bf16.vlgmr.msra.gmra.mrb[0].mxu0 %vm73_vm2, %v65_v5 }
   0xe   :  { %3107 = vmatprep.mubr.msk.bf16.mxu0 %vm3562_vm1, %v3561_v0  ;;  %3104 = vmatpush3.bf16.msra.mxu0 %v3453_v6 }
   0xf   :  { %3105 = vmatprep.subr.bf16.mxu0 %v3561_v0 }
  0x12   :  { %3106 = vmatpush3.bf16.msra.mxu0 %v3454_v7 }
  0x13   :  { %3111 = vmatprep.subr.bf16.mxu0 %v3561_v0 }
  0xe0   :  { %v115_v9 = vpop.f32.mrb[0].mxu0 }
  0xe1   :  { %v116_v10 = vadd.f32 %v2873_v8, %v115_v9  ;;  %v3101_v11 = vpop.f32.mrb[1].mxu0 }
  0xe2   :  { %v118_v13 = vpop.f32.mrb[2].mxu0 }
  0xe3   :  { %v119_v15 = vadd.f32 %v2873_v8, %v118_v13  ;;  %v3102_v16 = vpop.f32.mrb[3].mxu0  ;;  %v3701_v17 = vadd.f32 %v122_v12, %v116_v10 }
  0xe5   :  { %v3703_v18 = vadd.f32 %v123_v14, %v119_v15 }
  0xe7   :  { %v130_v19 = vpack.c.bf16 %v3703_v18, %v3701_v17 }
  0xe9   :  { %3108 = vmatmul.mubr.msk.bf16.vlgmr.msra.gmra.mrb[4].mxu0 %vm150_vm3, %v130_v19 }
  0xea   :  { %3113 = vmatprep.mubr.msk.bf16.mxu0 %vm3562_vm1, %v3561_v0 }
 0x1bc   :  { %v188_v21 = vpop.f32.mrb[4].mxu0 }
 0x1bd   :  { %v3109_v22 = vpop.f32.mrb[5].mxu0  ;;  %v189_v24 = vadd.f32 %v2875_v20, %v188_v21 }
 0x1be   :  { %v191_v23 = vpop.f32.mrb[6].mxu0 }
 0x1bf   :  { %v192_v25 = vadd.f32 %v2875_v20, %v191_v23  ;;  %v3110_v26 = vpop.f32.mrb[7].mxu0  ;;  %v215_v28 = vpack.c.bf16 %v189_v24, %v189_v24 }
 0x1c1   :  { %v3403_v27 = vpack.i.bf16 %v192_v25, %v189_v24  ;;  %v216_v29 = vpack.c.bf16 %v192_v25, %v192_v25 }
 0x1c3   :  { %3404 = vrot.lane.b32.xlu1 %v3403_v27, %s3563_s1  ;;  %3394 = vrot.lane.b32.xlu0 %v3403_v27, %s3564_s19 }
 0x1c7   :  { %224 = vrot.lane.b32.xlu1 %v215_v28, %s3565_s0  ;;  %3399 = vrot.lane.b32.xlu0 %v3403_v27, %s3566_s20 }
 0x1cb   :  { %274 = vrot.lane.b32.xlu0 %v216_v29, %s3565_s0 }
 0x235   :  { %v3405_v30 = vpop.permute.xlu1 %3404  ;;  %v3395_v31 = vpop.permute.xlu0 %3394 }
 0x236   :  { %v3397_v32 = vunpack.i.h.bf16 %v3395_v31  ;;  %v3396_v33 = vunpack.i.l.bf16 %v3395_v31  ;;  %v3406_v41 = vunpack.i.l.bf16 %v3405_v30  ;;  %v3407_v44 = vunpack.i.h.bf16 %v3405_v30 }
 0x238   :  { %v3718_v34 = vpack.c.bf16 %v3397_v32, %v3397_v32  ;;  %v3720_v35 = vpack.c.bf16 %v3396_v33, %v3396_v33  ;;  %v3736_v46 = vpack.c.bf16 %v3406_v41, %v3406_v41  ;;  %v3738_v47 = vpack.c.bf16 %v3407_v44, %v3407_v44 }
 0x239   :  { %v225_v36 = vpop.permute.xlu1 %224  ;;  %v3400_v37 = vpop.permute.xlu0 %3399 }
 0x23a   :  { %v231_v38 = vsel %vm226_vm4, %v225_v36, 0  ;;  %v3402_v39 = vunpack.i.h.bf16 %v3400_v37  ;;  %v3401_v40 = vunpack.i.l.bf16 %v3400_v37  ;;  %323 = vrot.lane.b32.xlu1 %v3720_v35, %s3565_s0  ;;  %372 = vrot.lane.b32.xlu0 %v3718_v34, %s3565_s0 }
 0x23b   :  { %3112 = vmatpush3.bf16.xpose.msra.mxu0 %v231_v38 }
 0x23c   :  { %v3727_v42 = vpack.c.bf16 %v3402_v39, %v3402_v39  ;;  %v3729_v43 = vpack.c.bf16 %v3401_v40, %v3401_v40  ;;  %3117 = vmatprep.subr.bf16.mxu0 %v3561_v0 }
 0x23d   :  { %v275_v45 = vpop.permute.xlu0 %274 }
 0x23e   :  { %421 = vrot.lane.b32.xlu1 %v3729_v43, %s3565_s0  ;;  %470 = vrot.lane.b32.xlu0 %v3727_v42, %s3565_s0  ;;  %v280_v48 = vsel %vm226_vm4, %v275_v45, 0 }
 0x242   :  { %3114 = vmatmul.mubr.msk.bf16.vlgmr.msra.gmra.mrb[8].mxu0 %vm226_vm4, %v215_v28  ;;  %519 = vrot.lane.b32.xlu1 %v3736_v46, %s3565_s0 }
 0x243   :  { %568 = vrot.lane.b32.xlu0 %v3738_v47, %s3565_s0  ;;  %3118 = vmatpush3.bf16.xpose.msra.mxu0 %v280_v48 }
 0x244   :  { %3119 = vmatprep.mubr.msk.bf16.mxu0 %vm3562_vm1, %v3561_v0  ;;  %3123 = vmatprep.subr.bf16.mxu0 %v3561_v0 }
 0x246   :  { %769 = vrot.lane.b32.xlu1 %v216_v29, %s3567_s21 }
 0x247   :  { %720 = vrot.lane.b32.xlu0 %v215_v28, %s3567_s21 }
 0x24a   :  { %3120 = vmatmul.mubr.msk.bf16.vlgmr.msra.gmra.mrb[12].mxu0 %vm226_vm4, %v216_v29 }
 0x24b   :  { %3125 = vmatprep.mubr.msk.bf16.mxu0 %vm3562_vm1, %v3561_v0 }
 0x2ac   :  { %v324_v49 = vpop.permute.xlu1 %323  ;;  %v373_v50 = vpop.permute.xlu0 %372 }
 0x2ad   :  { %v329_v51 = vsel %vm226_vm4, %v324_v49, 0  ;;  %v378_v52 = vsel %vm226_vm4, %v373_v50, 0 }
 0x2ae   :  { %3124 = vmatpush3.bf16.xpose.msra.mxu0 %v329_v51  ;;  %3130 = vmatpush3.bf16.xpose.msra.mxu1 %v378_v52 }
 0x2af   :  { %3135 = vmatprep.subr.bf16.mxu0 %v3561_v0  ;;  %3141 = vmatprep.subr.bf16.mxu1 %v3561_v0 }
 0x2b0   :  { %v422_v53 = vpop.permute.xlu1 %421  ;;  %v471_v54 = vpop.permute.xlu0 %470 }
 0x2b1   :  { %v427_v55 = vsel %vm226_vm4, %v422_v53, 0  ;;  %v476_v56 = vsel %vm226_vm4, %v471_v54, 0 }
 0x2b4   :  { %v520_v57 = vpop.permute.xlu1 %519 }
 0x2b5   :  { %3126 = vmatmul.mubr.msk.bf16.vlgmr.msra.gmra.mrb[16].mxu0 %vm226_vm4, %v3720_v35  ;;  %3132 = vmatmul.mubr.msk.bf16.vlgmr.msra.gmra.mrb[0].mxu1 %vm226_vm4, %v3718_v34  ;;  %v569_v58 = vpop.permute.xlu0 %568  ;;  %v525_v59 = vsel %vm226_vm4, %v520_v57, 0 }
 0x2b6   :  { %3136 = vmatpush3.bf16.xpose.msra.mxu0 %v427_v55  ;;  %3142 = vmatpush3.bf16.xpose.msra.mxu1 %v476_v56  ;;  %v574_v60 = vsel %vm226_vm4, %v569_v58, 0 }
 0x2b7   :  { %3137 = vmatprep.mubr.msk.bf16.mxu0 %vm3562_vm1, %v3561_v0  ;;  %3143 = vmatprep.mubr.msk.bf16.mxu1 %vm3562_vm1, %v3561_v0 }
 0x2b8   :  { %3147 = vmatprep.subr.bf16.mxu0 %v3561_v0  ;;  %3153 = vmatprep.subr.bf16.mxu1 %v3561_v0  ;;  %v770_v61 = vpop.permute.xlu1 %769 }
 0x2b9   :  { %v721_v62 = vpop.permute.xlu0 %720  ;;  %v775_v63 = vsel %vm725_vm5, %v770_v61, 0 }
 0x2ba   :  { %v727_v1 = vsel %vm725_vm5, %v721_v62, 0 }
 0x2bd   :  { %3138 = vmatmul.mubr.msk.bf16.vlgmr.msra.gmra.mrb[20].mxu0 %vm226_vm4, %v3729_v43  ;;  %3144 = vmatmul.mubr.msk.bf16.vlgmr.msra.gmra.mrb[4].mxu1 %vm226_vm4, %v3727_v42 }
 0x2be   :  { %3148 = vmatpush3.bf16.xpose.msra.mxu0 %v525_v59  ;;  %3154 = vmatpush3.bf16.xpose.msra.mxu1 %v574_v60 }
 0x2bf   :  { %3149 = vmatprep.mubr.msk.bf16.mxu0 %vm3562_vm1, %v3561_v0  ;;  %3155 = vmatprep.mubr.msk.bf16.mxu1 %vm3562_vm1, %v3561_v0 }
 0x2c0   :  { %3159 = vmatprep.subr.bf16.mxu0 %v3561_v0  ;;  %3165 = vmatprep.subr.bf16.mxu1 %v3561_v0 }
 0x2c5   :  { %3150 = vmatmul.mubr.msk.bf16.vlgmr.msra.gmra.mrb[24].mxu0 %vm226_vm4, %v3736_v46  ;;  %3156 = vmatmul.mubr.msk.bf16.vlgmr.msra.gmra.mrb[8].mxu1 %vm226_vm4, %v3738_v47 }
 0x2c6   :  { %3160 = vmatpush3.bf16.msra.mxu0 %v727_v1  ;;  %3166 = vmatpush3.bf16.msra.mxu1 %v775_v63 }
 0x2c7   :  { %3161 = vmatprep.mubr.msk.bf16.mxu0 %vm3562_vm1, %v3561_v0  ;;  %3167 = vmatprep.mubr.msk.bf16.mxu1 %vm3562_vm1, %v3561_v0 }
 0x2c8   :  { %3171 = vmatprep.subr.bf16.mxu0 %v3561_v0  ;;  %3177 = vmatprep.subr.bf16.mxu1 %v3561_v0 }
 0x315   :  { %v267_v2 = vpop.f32.mrb[8].mxu0 }
 0x316   :  { %v616_v3 = vmul.f32 0.35355338, %v267_v2  ;;  %v3115_v4 = vpop.f32.mrb[9].mxu0 }
 0x317   :  { %v270_v5 = vpop.f32.mrb[10].mxu0 }
 0x318   :  { %v3116_v6 = vpop.f32.mrb[11].mxu0  ;;  %v624_v7 = vsel %vm226_vm4, %v616_v3, -inf }
 0x319   :  { %625 = vmax.xlane.f32.xlu1 %v624_v7 }
 0x31d   :  { %v316_v8 = vpop.f32.mrb[12].mxu0 }
 0x31e   :  { %v617_v9 = vmul.f32 0.35355338, %v316_v8  ;;  %v3121_v10 = vpop.f32.mrb[13].mxu0 }
 0x31f   :  { %v319_v11 = vpop.f32.mrb[14].mxu0 }
 0x320   :  { %v3122_v12 = vpop.f32.mrb[15].mxu0  ;;  %v627_v13 = vsel %vm226_vm4, %v617_v9, -inf }
 0x321   :  { %628 = vmax.xlane.f32.xlu0 %v627_v13 }
 0x388   :  { %v365_v14 = vpop.f32.mrb[16].mxu0  ;;  %v414_v15 = vpop.f32.mrb[0].mxu1 }
 0x389   :  { %v618_v16 = vmul.f32 0.35355338, %v365_v14  ;;  %v619_v19 = vmul.f32 0.35355338, %v414_v15  ;;  %v3127_v20 = vpop.f32.mrb[17].mxu0  ;;  %v3133_v21 = vpop.f32.mrb[1].mxu1 }
 0x38a   :  { %v368_v22 = vpop.f32.mrb[18].mxu0  ;;  %v417_v23 = vpop.f32.mrb[2].mxu1 }
 0x38b   :  { %v3128_v24 = vpop.f32.mrb[19].mxu0  ;;  %v3134_v25 = vpop.f32.mrb[3].mxu1  ;;  %v633_v26 = vsel %vm226_vm4, %v619_v19, -inf  ;;  %v630_v27 = vsel %vm226_vm4, %v618_v16, -inf }
 0x38c   :  { %634 = vmax.xlane.f32.xlu1 %v633_v26  ;;  %631 = vmax.xlane.f32.xlu0 %v630_v27 }
 0x390   :  { %v463_v28 = vpop.f32.mrb[20].mxu0  ;;  %v512_v29 = vpop.f32.mrb[4].mxu1 }
 0x391   :  { %v3798_v30 = vmul.f32 0.35355338, %v463_v28  ;;  %v621_v31 = vmul.f32 0.35355338, %v512_v29  ;;  %v3139_v32 = vpop.f32.mrb[21].mxu0  ;;  %v3145_v33 = vpop.f32.mrb[5].mxu1 }
 0x392   :  { %v466_v36 = vpop.f32.mrb[22].mxu0  ;;  %v515_v37 = vpop.f32.mrb[6].mxu1 }
 0x393   :  { %v3140_v38 = vpop.f32.mrb[23].mxu0  ;;  %v3146_v39 = vpop.f32.mrb[7].mxu1  ;;  %v639_v40 = vsel %vm226_vm4, %v621_v31, -inf  ;;  %v636_v41 = vsel %vm226_vm4, %v3798_v30, -inf }
 0x394   :  { %640 = vmax.xlane.f32.xlu1 %v639_v40  ;;  %637 = vmax.xlane.f32.xlu0 %v636_v41 }
 0x398   :  { %v561_v44 = vpop.f32.mrb[24].mxu0  ;;  %v610_v45 = vpop.f32.mrb[8].mxu1 }
 0x399   :  { %v3803_v48 = vmul.f32 0.35355338, %v561_v44  ;;  %v623_v49 = vmul.f32 0.35355338, %v610_v45  ;;  %v3151_v50 = vpop.f32.mrb[25].mxu0  ;;  %v3157_v51 = vpop.f32.mrb[9].mxu1 }
 0x39a   :  { %v564_v52 = vpop.f32.mrb[26].mxu0  ;;  %v613_v53 = vpop.f32.mrb[10].mxu1 }
 0x39b   :  { %v3152_v54 = vpop.f32.mrb[27].mxu0  ;;  %v3158_v55 = vpop.f32.mrb[11].mxu1  ;;  %v645_v56 = vsel %vm226_vm4, %v623_v49, -inf  ;;  %v642_v57 = vsel %vm226_vm4, %v3803_v48, -inf }
 0x39c   :  { %646 = vmax.xlane.f32.xlu1 %v645_v56  ;;  %643 = vmax.xlane.f32.xlu0 %v642_v57 }
 0x3a6   :  { %v626_v58 = vpop.xlane.xlu1 %625 }
 0x3a7   :  { %v648_v60 = vsub.f32 %v616_v3, %v626_v58 }
 0x3a9   :  { %v656_v62 = vmul.f32 1.442695, %v648_v60 }
 0x3ab   :  { %3481 = vpow2.f32 %v656_v62 }
 0x3ad   :  { %817 = vrot.lane.b32.xlu1 %v3720_v35, %s3567_s21 }
 0x3ae   :  { %v629_v59 = vpop.xlane.xlu0 %628 }
 0x3af   :  { %v649_v61 = vsub.f32 %v617_v9, %v629_v59 }
 0x3b1   :  { %v658_v63 = vmul.f32 1.442695, %v649_v61 }
 0x3b2   :  { %865 = vrot.lane.b32.xlu0 %v3718_v34, %s3567_s21 }
 0x3b3   :  { %3483 = vpow2.f32 %v658_v63 }
 0x3b5   :  { %v3482_v1 = vpop.eup %3481 }
 0x3b6   :  { %v672_v5 = vsel %vm226_vm4, %v3482_v1, 0.0 }
 0x3bd   :  { %v3484_v2 = vpop.eup %3483 }
 0x3be   :  { %v675_v4 = vsel %vm226_vm4, %v3484_v2, 0.0 }
 0x3d1   :  { %676 = vadd.xlane.f32.xlu1 %v675_v4  ;;  %673 = vadd.xlane.f32.xlu0 %v672_v5 }
 0x3e2   :  { %913 = vrot.lane.b32.xlu1 %v3729_v43, %s3567_s21 }
 0x419   :  { %v635_v34 = vpop.xlane.xlu1 %634  ;;  %v632_v35 = vpop.xlane.xlu0 %631 }
 0x41a   :  { %v651_v6 = vsub.f32 %v619_v19, %v635_v34  ;;  %v650_v3 = vsub.f32 %v618_v16, %v632_v35 }
 0x41c   :  { %v662_v7 = vmul.f32 1.442695, %v651_v6  ;;  %v660_v8 = vmul.f32 1.442695, %v650_v3 }
 0x41e   :  { %3485 = vpow2.f32 %v662_v7 }
 0x41f   :  { %3487 = vpow2.f32 %v660_v8 }
 0x421   :  { %v641_v9 = vpop.xlane.xlu1 %640  ;;  %v638_v24 = vpop.xlane.xlu0 %637 }
 0x422   :  { %v653_v10 = vsub.f32 %v621_v31, %v641_v9  ;;  %v652_v25 = vsub.f32 %v3798_v30, %v638_v24 }
 0x424   :  { %v666_v11 = vmul.f32 1.442695, %v653_v10  ;;  %v664_v27 = vmul.f32 1.442695, %v652_v25 }
 0x426   :  { %3489 = vpow2.f32 %v666_v11 }
 0x428   :  { %v3816_v12 = vpop.eup %3485 }
 0x429   :  { %v3818_v13 = vpop.eup %3487  ;;  %v647_v14 = vpop.xlane.xlu1 %646  ;;  %v681_v43 = vsel %vm226_vm4, %v3816_v12, 0.0 }
 0x42a   :  { %v655_v15 = vsub.f32 %v623_v49, %v647_v14  ;;  %682 = vadd.xlane.f32.xlu1 %v681_v43  ;;  %v678_v16 = vsel %vm226_vm4, %v3818_v13, 0.0  ;;  %v644_v26 = vpop.xlane.xlu0 %643 }
 0x42b   :  { %679 = vadd.xlane.f32.xlu0 %v678_v16  ;;  %v654_v28 = vsub.f32 %v3803_v48, %v644_v26 }
 0x42c   :  { %v670_v19 = vmul.f32 1.442695, %v655_v15 }
 0x42d   :  { %v668_v29 = vmul.f32 1.442695, %v654_v28  ;;  %v818_v31 = vpop.permute.xlu1 %817 }
 0x42e   :  { %3491 = vpow2.f32 %v670_v19  ;;  %v866_v32 = vpop.permute.xlu0 %865  ;;  %v823_v49 = vsel %vm725_vm5, %v818_v31, 0 }
 0x42f   :  { %3493 = vpow2.f32 %v664_v27  ;;  %v871_v48 = vsel %vm725_vm5, %v866_v32, 0 }
 0x430   :  { %v3824_v20 = vpop.eup %3489  ;;  %3495 = vpow2.f32 %v668_v29 }
 0x431   :  { %v687_v21 = vsel %vm226_vm4, %v3824_v20, 0.0 }
 0x432   :  { %688 = vadd.xlane.f32.xlu1 %v687_v21 }
 0x438   :  { %v3828_v22 = vpop.eup %3491 }
 0x439   :  { %v693_v23 = vsel %vm226_vm4, %v3828_v22, 0.0  ;;  %v3838_v33 = vpop.eup %3493 }
 0x43a   :  { %694 = vadd.xlane.f32.xlu1 %v693_v23  ;;  %v3842_v30 = vpop.eup %3495 }
 0x441   :  { %961 = vrot.lane.b32.xlu0 %v3727_v42, %s3567_s21  ;;  %v684_v42 = vsel %vm226_vm4, %v3838_v33, 0.0 }
 0x44b   :  { %1009 = vrot.lane.b32.xlu1 %v3736_v46, %s3567_s21  ;;  %v690_v46 = vsel %vm226_vm4, %v3842_v30, 0.0 }
 0x45e   :  { %v677_v36 = vpop.xlane.xlu1 %676  ;;  %v674_v37 = vpop.xlane.xlu0 %673 }
 0x45f   :  { %3497 = vrcp.f32 %v677_v36 }
 0x460   :  { %3499 = vrcp.f32 %v674_v37  ;;  %685 = vadd.xlane.f32.xlu0 %v684_v42 }
 0x462   :  { %v914_v50 = vpop.permute.xlu1 %913 }
 0x464   :  { %691 = vadd.xlane.f32.xlu0 %v690_v46 }
 0x469   :  { %v3498_v38 = vpop.eup %3497 }
 0x46a   :  { %v3500_v39 = vpop.eup %3499  ;;  %v705_v40 = vmul.f32 %v3498_v38, %v3484_v2  ;;  %v3455_v38 = vld [vmem:[%s4293_s6] sm:$0xff]  }
 0x46b   :  { %v704_v41 = vmul.f32 %v3500_v39, %v3482_v1 }
 0x46c   :  { %v713_v44 = vpack.c.bf16 %v705_v40, %v705_v40 }
 0x46d   :  { %v712_v45 = vpack.c.bf16 %v704_v41, %v704_v41 }
 0x46e   :  { %3168 = vmatmul.mubr.msk.bf16.vlgmr.msra.gmra.mrb[12].mxu1 %vm226_vm4, %v713_v44  ;;  %v3456_v44 = vld [vmem:[%s4293_s6 + $0x8] sm:$0xff]  }
 0x46f   :  { %3162 = vmatmul.mubr.msk.bf16.vlgmr.msra.gmra.mrb[28].mxu0 %vm226_vm4, %v712_v45  ;;  %3178 = vmatpush3.bf16.msra.mxu1 %v871_v48 }
 0x470   :  { %3172 = vmatpush3.bf16.msra.mxu0 %v823_v49  ;;  %3173 = vmatprep.mubr.msk.bf16.mxu0 %vm3562_vm1, %v3561_v0 }
 0x471   :  { %3179 = vmatprep.mubr.msk.bf16.mxu1 %vm3562_vm1, %v3561_v0  ;;  %3183 = vmatprep.subr.bf16.mxu0 %v3561_v0 }
 0x472   :  { %3189 = vmatprep.subr.bf16.mxu1 %v3561_v0 }
 0x47a   :  { %1057 = vrot.lane.b32.xlu0 %v3738_v47, %s3567_s21  ;;  %v919_v47 = vsel %vm725_vm5, %v914_v50, 0 }
 0x4b7   :  { %v683_v51 = vpop.xlane.xlu1 %682 }
 0x4b8   :  { %3501 = vrcp.f32 %v683_v51  ;;  %v680_v52 = vpop.xlane.xlu0 %679 }
 0x4b9   :  { %3503 = vrcp.f32 %v680_v52 }
 0x4bc   :  { %v962_v58 = vpop.permute.xlu0 %961 }
 0x4bd   :  { %v967_v61 = vsel %vm725_vm5, %v962_v58, 0 }
 0x4bf   :  { %v689_v53 = vpop.xlane.xlu1 %688 }
 0x4c0   :  { %3505 = vrcp.f32 %v689_v53 }
 0x4c2   :  { %v3502_v54 = vpop.eup %3501 }
 0x4c3   :  { %v3504_v55 = vpop.eup %3503  ;;  %v707_v56 = vmul.f32 %v3502_v54, %v3816_v12 }
 0x4c4   :  { %v706_v57 = vmul.f32 %v3504_v55, %v3818_v13 }
 0x4c5   :  { %v715_v59 = vpack.c.bf16 %v707_v56, %v707_v56 }
 0x4c6   :  { %v714_v60 = vpack.c.bf16 %v706_v57, %v706_v57 }
 0x4c7   :  { %3180 = vmatmul.mubr.msk.bf16.vlgmr.msra.gmra.mrb[16].mxu1 %vm226_vm4, %v715_v59  ;;  %v695_v2 = vpop.xlane.xlu1 %694 }
 0x4c8   :  { %3174 = vmatmul.mubr.msk.bf16.vlgmr.msra.gmra.mrb[32].mxu0 %vm226_vm4, %v714_v60  ;;  %3190 = vmatpush3.bf16.msra.mxu1 %v967_v61  ;;  %3507 = vrcp.f32 %v695_v2 }
 0x4c9   :  { %3184 = vmatpush3.bf16.msra.mxu0 %v919_v47  ;;  %3191 = vmatprep.mubr.msk.bf16.mxu1 %vm3562_vm1, %v3561_v0 }
 0x4ca   :  { %v3506_v62 = vpop.eup %3505  ;;  %3201 = vmatprep.subr.bf16.mxu1 %v3561_v0  ;;  %3185 = vmatprep.mubr.msk.bf16.mxu0 %vm3562_vm1, %v3561_v0 }
 0x4cb   :  { %v709_v63 = vmul.f32 %v3506_v62, %v3824_v20  ;;  %3195 = vmatprep.subr.bf16.mxu0 %v3561_v0  ;;  %v1010_v10 = vpop.permute.xlu1 %1009 }
 0x4cc   :  { %v1015_v13 = vsel %vm725_vm5, %v1010_v10, 0 }
 0x4cd   :  { %v717_v1 = vpack.c.bf16 %v709_v63, %v709_v63 }
 0x4cf   :  { %3192 = vmatmul.mubr.msk.bf16.vlgmr.msra.gmra.mrb[20].mxu1 %vm226_vm4, %v717_v1 }
 0x4d0   :  { %3203 = vmatprep.mubr.msk.bf16.mxu1 %vm3562_vm1, %v3561_v0 }
 0x4d2   :  { %v3508_v5 = vpop.eup %3507 }
 0x4d3   :  { %v711_v35 = vmul.f32 %v3508_v5, %v3828_v22 }
 0x4d5   :  { %v719_v8 = vpack.c.bf16 %v711_v35, %v711_v35 }
 0x4ed   :  { %v686_v4 = vpop.xlane.xlu0 %685 }
 0x4ee   :  { %3509 = vrcp.f32 %v686_v4 }
 0x4f1   :  { %v692_v34 = vpop.xlane.xlu0 %691 }
 0x4f2   :  { %3511 = vrcp.f32 %v692_v34 }
 0x4f5   :  { %v1058_v6 = vpop.permute.xlu0 %1057 }
 0x4f6   :  { %v1063_v3 = vsel %vm725_vm5, %v1058_v6, 0 }
 0x4f7   :  { %3202 = vmatpush3.bf16.msra.mxu1 %v1063_v3 }
 0x4f8   :  { %v3510_v7 = vpop.eup %3509  ;;  %3215 = vmatprep.subr.bf16.mxu1 %v3561_v0 }
 0x4f9   :  { %v708_v9 = vmul.f32 %v3510_v7, %v3838_v33 }
 0x4fa   :  { %3204 = vmatmul.mubr.msk.bf16.vlgmr.msra.gmra.mrb[24].mxu1 %vm226_vm4, %v719_v8  ;;  %v2895_v8 = vld [vmem:[%s4294_s7] ss:$0 sm:$0xff] }
 0x4fb   :  { %v716_v11 = vpack.c.bf16 %v708_v9, %v708_v9  ;;  %3219 = vmatprep.mubr.msk.bf16.mxu1 %vm3562_vm1, %v3561_v0 }
 0x4fc   :  { %v3512_v12 = vpop.eup %3511 }
 0x4fd   :  { %3186 = vmatmul.mubr.msk.bf16.vlgmr.msra.gmra.mrb[36].mxu0 %vm226_vm4, %v716_v11  ;;  %v710_v14 = vmul.f32 %v3512_v12, %v3842_v30 }
 0x4fe   :  { %3196 = vmatpush3.bf16.msra.mxu0 %v1015_v13  ;;  %3197 = vmatprep.mubr.msk.bf16.mxu0 %vm3562_vm1, %v3561_v0 }
 0x4ff   :  { %3207 = vmatprep.subr.bf16.mxu0 %v3561_v0  ;;  %v718_v43 = vpack.c.bf16 %v710_v14, %v710_v14 }
 0x505   :  { %3198 = vmatmul.mubr.msk.bf16.vlgmr.msra.gmra.mrb[40].mxu0 %vm226_vm4, %v718_v43 }
 0x506   :  { %3211 = vmatprep.mubr.msk.bf16.mxu0 %vm3562_vm1, %v3561_v0  ;;  %3208 = vmatpush3.bf16.msra.mxu0 %v3455_v38 }
 0x507   :  { %3209 = vmatprep.subr.bf16.mxu0 %v3561_v0 }
 0x50a   :  { %3210 = vmatpush3.bf16.msra.mxu0 %v3456_v44 }
 0x50b   :  { %3223 = vmatprep.subr.bf16.mxu0 %v3561_v0 }
 0x541   :  { %v811_v15 = vpop.f32.mrb[12].mxu1 }
 0x542   :  { %v763_v16 = vpop.f32.mrb[28].mxu0  ;;  %v3169_v19 = vpop.f32.mrb[13].mxu1 }
 0x543   :  { %v3163_v20 = vpop.f32.mrb[29].mxu0  ;;  %v814_v21 = vpop.f32.mrb[14].mxu1 }
 0x544   :  { %v766_v22 = vpop.f32.mrb[30].mxu0  ;;  %v3170_v23 = vpop.f32.mrb[15].mxu1 }
 0x545   :  { %v3164_v24 = vpop.f32.mrb[31].mxu0 }
 0x59a   :  { %v907_v25 = vpop.f32.mrb[16].mxu1 }
 0x59b   :  { %v859_v26 = vpop.f32.mrb[32].mxu0  ;;  %v3181_v27 = vpop.f32.mrb[17].mxu1 }
 0x59c   :  { %v3408_v28 = vpack.i.bf16 %v907_v25, %v859_v26  ;;  %v3175_v29 = vpop.f32.mrb[33].mxu0  ;;  %v910_v31 = vpop.f32.mrb[18].mxu1 }
 0x59d   :  { %v862_v32 = vpop.f32.mrb[34].mxu0  ;;  %v3182_v33 = vpop.f32.mrb[19].mxu1  ;;  %v3458_v29 = vld [vmem:[%s4295_s10 + $0x8] sm:$0xff]   ;;  %v3459_v31 = vld [vmem:[%s4296_s12] sm:$0xff]  }
 0x59e   :  { %3409 = vrot.lane.b32.xlu1 %v3408_v28, %s3568_s22  ;;  %v3176_v36 = vpop.f32.mrb[35].mxu0  ;;  %v3460_v32 = vld [vmem:[%s4296_s12 + $0x8] sm:$0xff]   ;;  %v3461_v33 = vld [vmem:[%s4296_s12 + $0x10] sm:$0xff]  }
 0x59f   :  { %v3462_v36 = vld [vmem:[%s4296_s12 + $0x18] sm:$0xff]  }
 0x5a2   :  { %v1003_v37 = vpop.f32.mrb[20].mxu1 }
 0x5a3   :  { %v3193_v42 = vpop.f32.mrb[21].mxu1 }
 0x5a4   :  { %v1006_v30 = vpop.f32.mrb[22].mxu1  ;;  %v3464_v42 = vld [vmem:[%s4296_s12 + $0x28] sm:$0xff]  }
 0x5a5   :  { %v3194_v46 = vpop.f32.mrb[23].mxu1 }
 0x5cd   :  { %v1099_v39 = vpop.f32.mrb[24].mxu1 }
 0x5ce   :  { %v3205_v40 = vpop.f32.mrb[25].mxu1 }
 0x5cf   :  { %v1102_v41 = vpop.f32.mrb[26].mxu1 }
 0x5d0   :  { %v955_v45 = vpop.f32.mrb[36].mxu0  ;;  %v3206_v48 = vpop.f32.mrb[27].mxu1 }
 0x5d1   :  { %v3413_v49 = vpack.i.bf16 %v1003_v37, %v955_v45  ;;  %v3187_v50 = vpop.f32.mrb[37].mxu0  ;;  %v3463_v37 = vld [vmem:[%s4296_s12 + $0x20] sm:$0xff]  }
 0x5d2   :  { %v958_v51 = vpop.f32.mrb[38].mxu0  ;;  %v2899_v48 = vld [vmem:[%s4297_s8] ss:$0 sm:$0xff] }
 0x5d3   :  { %3414 = vrot.lane.b32.xlu0 %v3413_v49, %s3569_s27  ;;  %v3188_v52 = vpop.f32.mrb[39].mxu0 }
 0x5d4   :  { %v2900_v52 = vld [vmem:[%s4298_s9] ss:$0 sm:$0xff] }
 0x5d8   :  { %v1051_v53 = vpop.f32.mrb[40].mxu0 }
 0x5d9   :  { %v3418_v54 = vpack.i.bf16 %v1099_v39, %v1051_v53  ;;  %v3199_v55 = vpop.f32.mrb[41].mxu0 }
 0x5da   :  { %v1054_v56 = vpop.f32.mrb[42].mxu0 }
 0x5db   :  { %3419 = vrot.lane.b32.xlu1 %v3418_v54, %s3570_s28  ;;  %v3200_v57 = vpop.f32.mrb[43].mxu0 }
 0x5dc   :  { %v3465_v57 = vld [vmem:[%s4296_s12 + $0x30] sm:$0xff]  }
 0x610   :  { %v3410_v58 = vpop.permute.xlu1 %3409 }
 0x611   :  { %v3412_v60 = vunpack.i.h.bf16 %v3410_v58  ;;  %v3411_v61 = vunpack.i.l.bf16 %v3410_v58  ;;  %v3466_v58 = vld [vmem:[%s4296_s12 + $0x38] sm:$0xff]  }
 0x613   :  { %v1130_v1 = vsel %vm226_vm4, %v811_v15, %v3412_v60  ;;  %v1129_v2 = vsel %vm226_vm4, %v763_v16, %v3411_v61 }
 0x645   :  { %v3415_v59 = vpop.permute.xlu0 %3414 }
 0x646   :  { %v3417_v47 = vunpack.i.h.bf16 %v3415_v59  ;;  %v3416_v62 = vunpack.i.l.bf16 %v3415_v59  ;;  %v2901_v59 = vld [vmem:[%s4299_s11] ss:$0 sm:$0xff] }
 0x648   :  { %v1133_v34 = vsel %vm1131_vm6, %v1130_v1, %v3417_v47  ;;  %v1132_v35 = vsel %vm1131_vm6, %v1129_v2, %v3416_v62 }
 0x64d   :  { %v3420_v63 = vpop.permute.xlu1 %3419 }
 0x64e   :  { %v3422_v4 = vunpack.i.h.bf16 %v3420_v63  ;;  %v3421_v5 = vunpack.i.l.bf16 %v3420_v63 }
 0x650   :  { %v1136_v6 = vsel %vm1134_vm7, %v1133_v34, %v3422_v4  ;;  %v1135_v3 = vsel %vm1134_vm7, %v1132_v35, %v3421_v5  ;;  %v2905_v34 = vld [vmem:[%s4300_s13] ss:$0 sm:$0xff] }
 0x651   :  { %v1141_v7 = vpack.c.bf16 %v1136_v6, %v1135_v3 }
 0x653   :  { %3212 = vmatmul.mubr.msk.bf16.vlgmr.msra.gmra.mrb[44].mxu0 %vm150_vm3, %v1141_v7 }
 0x654   :  { %3239 = vmatprep.mubr.msk.bf16.mxu0 %vm3562_vm1, %v3561_v0  ;;  %3224 = vmatpush3.bf16.msra.mxu0 %v3459_v31 }
 0x655   :  { %3225 = vmatprep.subr.bf16.mxu0 %v3561_v0 }
 0x658   :  { %3226 = vmatpush3.bf16.msra.mxu0 %v3460_v32 }
 0x659   :  { %3227 = vmatprep.subr.bf16.mxu0 %v3561_v0 }
 0x65c   :  { %3228 = vmatpush3.bf16.msra.mxu0 %v3461_v33  ;;  %v2914_v33 = vld [vmem:[%s4301_s14] ss:$0 sm:$0xff] }
 0x65d   :  { %3229 = vmatprep.subr.bf16.mxu0 %v3561_v0 }
 0x660   :  { %3230 = vmatpush3.bf16.msra.mxu0 %v3462_v36 }
 0x661   :  { %3231 = vmatprep.subr.bf16.mxu0 %v3561_v0 }
 0x664   :  { %3232 = vmatpush3.bf16.msra.mxu0 %v3463_v37 }
 0x665   :  { %3233 = vmatprep.subr.bf16.mxu0 %v3561_v0 }
 0x668   :  { %3234 = vmatpush3.bf16.msra.mxu0 %v3464_v42 }
 0x669   :  { %3235 = vmatprep.subr.bf16.mxu0 %v3561_v0 }
 0x66c   :  { %3236 = vmatpush3.bf16.msra.mxu0 %v3465_v57 }
 0x66d   :  { %3237 = vmatprep.subr.bf16.mxu0 %v3561_v0 }
 0x670   :  { %3238 = vmatpush3.bf16.msra.mxu0 %v3466_v58 }
 0x671   :  { %3269 = vmatprep.subr.bf16.mxu0 %v3561_v0 }
 0x726   :  { %v1198_v9 = vpop.f32.mrb[44].mxu0 }
 0x727   :  { %v1199_v10 = vadd.f32 %v2895_v8, %v1198_v9  ;;  %v3213_v11 = vpop.f32.mrb[45].mxu0 }
 0x728   :  { %v1201_v12 = vpop.f32.mrb[46].mxu0 }
 0x729   :  { %v1202_v13 = vadd.f32 %v2895_v8, %v1201_v12  ;;  %v3214_v14 = vpop.f32.mrb[47].mxu0  ;;  %v1205_v43 = vadd.f32 %v1199_v10, %v3701_v17 }
 0x72b   :  { %v1209_v15 = vsel %vm150_vm3, %v1205_v43, 0.0  ;;  %v1206_v16 = vadd.f32 %v1202_v13, %v3703_v18  ;;  %v3457_v18 = vld [vmem:[%s4295_s10] sm:$0xff]  }
 0x72c   :  { %1210 = vadd.xlane.f32.xlu0 %v1209_v15  ;;  %3216 = vmatpush3.bf16.msra.mxu1 %v3457_v18 }
 0x72d   :  { %v1212_v19 = vsel %vm150_vm3, %v1206_v16, 0.0  ;;  %3217 = vmatprep.subr.bf16.mxu1 %v3561_v0 }
 0x72e   :  { %1213 = vadd.xlane.f32.xlu1 %v1212_v19 }
 0x730   :  { %3218 = vmatpush3.bf16.msra.mxu1 %v3458_v29 }
 0x731   :  { %3243 = vmatprep.subr.bf16.mxu1 %v3561_v0 }
 0x7b9   :  { %v1211_v20 = vpop.xlane.xlu0 %1210 }
 0x7ba   :  { %v1216_v21 = vmul.f32 0.03125, %v1211_v20 }
 0x7bb   :  { %v1214_v22 = vpop.xlane.xlu1 %1213 }
 0x7bc   :  { %v1218_v23 = vsub.f32 %v1205_v43, %v1216_v21  ;;  %v1217_v24 = vmul.f32 0.03125, %v1214_v22 }
 0x7be   :  { %v1219_v25 = vsub.f32 %v1206_v16, %v1217_v24  ;;  %v1220_v26 = vmul.f32 %v1218_v23, %v1218_v23 }
 0x7c0   :  { %v1222_v27 = vsel %vm150_vm3, %v1220_v26, 0.0  ;;  %v1221_v28 = vmul.f32 %v1219_v25, %v1219_v25  ;;  %v3468_v26 = vld [vmem:[%s4313_s4 + $0x18] sm:$0xff]  }
 0x7c1   :  { %1223 = vadd.xlane.f32.xlu0 %v1222_v27 }
 0x7c2   :  { %v1225_v17 = vsel %vm150_vm3, %v1221_v28, 0.0 }
 0x7c5   :  { %1226 = vadd.xlane.f32.xlu0 %v1225_v17 }
 0x84e   :  { %v1224_v30 = vpop.xlane.xlu0 %1223 }
 0x84f   :  { %v1228_v46 = vmul.f32 0.03125, %v1224_v30 }
 0x851   :  { %v1230_v38 = vadd.f32 1e-05, %v1228_v46  ;;  %v2915_v46 = vld [vmem:[%s4302_s15] ss:$0 sm:$0xff] }
 0x852   :  { %v1227_v39 = vpop.xlane.xlu0 %1226 }
 0x853   :  { %3513 = vrsqrt.f32 %v1230_v38  ;;  %v1229_v40 = vmul.f32 0.03125, %v1227_v39 }
 0x855   :  { %v1231_v41 = vadd.f32 1e-05, %v1229_v40 }
 0x857   :  { %3515 = vrsqrt.f32 %v1231_v41 }
 0x85d   :  { %v3514_v44 = vpop.eup %3513 }
 0x85e   :  { %v1234_v45 = vmul.f32 %v3514_v44, %v1218_v23  ;;  %v2921_v44 = vld [vmem:[%s4292_s5 + $0x1] ss:$0 sm:$0xff] }
 0x860   :  { %v1242_v50 = vmul.f32 %v2899_v48, %v1234_v45 }
 0x861   :  { %v3516_v49 = vpop.eup %3515 }
 0x862   :  { %v1235_v51 = vmul.f32 %v3516_v49, %v1219_v25  ;;  %v1250_v54 = vadd.f32 %v2900_v52, %v1242_v50  ;;  %v3467_v25 = vld [vmem:[%s4313_s4 + $0x10] sm:$0xff]  }
 0x864   :  { %v1243_v53 = vmul.f32 %v2899_v48, %v1235_v51 }
 0x866   :  { %v1251_v55 = vadd.f32 %v2900_v52, %v1243_v53 }
 0x868   :  { %v1256_v56 = vpack.c.bf16 %v1251_v55, %v1250_v54 }
 0x86a   :  { %3220 = vmatmul.mubr.msk.bf16.vlgmr.msra.gmra.mrb[28].mxu1 %vm150_vm3, %v1256_v56 }
 0x86b   :  { %3247 = vmatprep.mubr.msk.bf16.mxu1 %vm3562_vm1, %v3561_v0  ;;  %3244 = vmatpush3.bf16.msra.mxu1 %v3467_v25 }
 0x86c   :  { %3245 = vmatprep.subr.bf16.mxu1 %v3561_v0 }
 0x86f   :  { %3246 = vmatpush3.bf16.msra.mxu1 %v3468_v26 }
 0x870   :  { %3251 = vmatprep.subr.bf16.mxu1 %v3561_v0 }
 0x93d   :  { %v1313_v60 = vpop.f32.mrb[28].mxu1 }
 0x93e   :  { %v1314_v61 = vadd.f32 %v2901_v59, %v1313_v60  ;;  %v3221_v47 = vpop.f32.mrb[29].mxu1 }
 0x93f   :  { %v1316_v62 = vpop.f32.mrb[30].mxu1 }
 0x940   :  { %v1317_v63 = vadd.f32 %v2901_v59, %v1316_v62  ;;  %v3222_v1 = vpop.f32.mrb[31].mxu1  ;;  %v1320_v2 = vmax.f32 %v1314_v61, 0.0 }
 0x942   :  { %v1321_v4 = vmax.f32 %v1317_v63, 0.0 }
 0x944   :  { %v1338_v5 = vpack.c.bf16 %v1321_v4, %v1320_v2 }
 0x946   :  { %3240 = vmatmul.mubr.bf16.vlgmr.msra.gmra.mrb[48].mxu0 %v1338_v5 }
 0x947   :  { %3271 = vmatprep.mubr.msk.bf16.mxu0 %vm3562_vm1, %v3561_v0 }
 0xa19   :  { %v1428_v35 = vpop.f32.mrb[48].mxu0 }
 0xa1a   :  { %v1429_v6 = vadd.f32 %v2905_v34, %v1428_v35  ;;  %v3241_v3 = vpop.f32.mrb[49].mxu0 }
 0xa1b   :  { %v1431_v7 = vpop.f32.mrb[50].mxu0 }
 0xa1c   :  { %v1432_v8 = vadd.f32 %v2905_v34, %v1431_v7  ;;  %v3242_v9 = vpop.f32.mrb[51].mxu0  ;;  %v1435_v10 = vadd.f32 %v1429_v6, %v1250_v54 }
 0xa1e   :  { %v1439_v11 = vsel %vm150_vm3, %v1435_v10, 0.0  ;;  %v1436_v12 = vadd.f32 %v1432_v8, %v1251_v55 }
 0xa1f   :  { %1440 = vadd.xlane.f32.xlu1 %v1439_v11 }
 0xa20   :  { %v1442_v13 = vsel %vm150_vm3, %v1436_v12, 0.0 }
 0xa21   :  { %1443 = vadd.xlane.f32.xlu0 %v1442_v13 }
 0xaac   :  { %v1441_v14 = vpop.xlane.xlu1 %1440 }
 0xaad   :  { %v1445_v43 = vmul.f32 0.03125, %v1441_v14 }
 0xaae   :  { %v1444_v15 = vpop.xlane.xlu0 %1443 }
 0xaaf   :  { %v1447_v16 = vsub.f32 %v1435_v10, %v1445_v43  ;;  %v1446_v19 = vmul.f32 0.03125, %v1444_v15 }
 0xab1   :  { %v1448_v20 = vsub.f32 %v1436_v12, %v1446_v19  ;;  %v1449_v21 = vmul.f32 %v1447_v16, %v1447_v16 }
 0xab3   :  { %v1451_v22 = vsel %vm150_vm3, %v1449_v21, 0.0  ;;  %v1450_v23 = vmul.f32 %v1448_v20, %v1448_v20 }
 0xab4   :  { %1452 = vadd.xlane.f32.xlu1 %v1451_v22 }
 0xab5   :  { %v1454_v24 = vsel %vm150_vm3, %v1450_v23, 0.0 }
 0xab6   :  { %1455 = vadd.xlane.f32.xlu0 %v1454_v24 }
 0xb41   :  { %v1453_v27 = vpop.xlane.xlu1 %1452 }
 0xb42   :  { %v1457_v28 = vmul.f32 0.03125, %v1453_v27 }
 0xb43   :  { %v1456_v17 = vpop.xlane.xlu0 %1455 }
 0xb44   :  { %v1459_v18 = vadd.f32 1e-05, %v1457_v28  ;;  %v1458_v29 = vmul.f32 0.03125, %v1456_v17 }
 0xb46   :  { %3517 = vrsqrt.f32 %v1459_v18  ;;  %v1460_v31 = vadd.f32 1e-05, %v1458_v29 }
 0xb48   :  { %3519 = vrsqrt.f32 %v1460_v31 }
 0xb50   :  { %v3518_v32 = vpop.eup %3517 }
 0xb51   :  { %v1463_v36 = vmul.f32 %v3518_v32, %v1447_v16 }
 0xb52   :  { %v3520_v37 = vpop.eup %3519 }
 0xb53   :  { %v1471_v42 = vmul.f32 %v2914_v33, %v1463_v36  ;;  %v1464_v30 = vmul.f32 %v3520_v37, %v1448_v20 }
 0xb55   :  { %v1472_v38 = vmul.f32 %v2914_v33, %v1464_v30  ;;  %v3994_v39 = vadd.f32 %v2915_v46, %v1471_v42 }
 0xb57   :  { %v3996_v40 = vadd.f32 %v2915_v46, %v1472_v38 }
 0xb59   :  { %v1486_v41 = vpack.c.bf16 %v3996_v40, %v3994_v39 }
 0xb5b   :  { %3248 = vmatmul.mubr.msk.bf16.vlgmr.msra.gmra.mrb[32].mxu1 %vm150_vm3, %v1486_v41 }
 0xb5c   :  { %3253 = vmatprep.mubr.msk.bf16.mxu1 %vm3562_vm1, %v3561_v0 }
 0xc2e   :  { %v1544_v45 = vpop.f32.mrb[32].mxu1 }
 0xc2f   :  { %v3249_v48 = vpop.f32.mrb[33].mxu1  ;;  %v1545_v50 = vadd.f32 %v2921_v44, %v1544_v45 }
 0xc30   :  { %v1547_v49 = vpop.f32.mrb[34].mxu1 }
 0xc31   :  { %v1548_v51 = vadd.f32 %v2921_v44, %v1547_v49  ;;  %v3250_v52 = vpop.f32.mrb[35].mxu1  ;;  %v1571_v55 = vpack.c.bf16 %v1545_v50, %v1545_v50 }
 0xc33   :  { %v3428_v53 = vpack.i.bf16 %v1548_v51, %v1545_v50  ;;  %v1572_v54 = vpack.c.bf16 %v1548_v51, %v1548_v51 }
 0xc35   :  { %3429 = vrot.lane.b32.xlu0 %v3428_v53, %s3566_s20  ;;  %3424 = vrot.lane.b32.xlu1 %v3428_v53, %s3564_s19 }
 0xc39   :  { %3434 = vrot.lane.b32.xlu1 %v3428_v53, %s3563_s1  ;;  %1629 = vrot.lane.b32.xlu0 %v1572_v54, %s3565_s0 }
 0xc3d   :  { %1580 = vrot.lane.b32.xlu1 %v1571_v55, %s3565_s0 }
 0xca7   :  { %v3430_v56 = vpop.permute.xlu0 %3429  ;;  %v3425_v57 = vpop.permute.xlu1 %3424 }
 0xca8   :  { %v3427_v58 = vunpack.i.h.bf16 %v3425_v57  ;;  %v3426_v59 = vunpack.i.l.bf16 %v3425_v57  ;;  %v3432_v60 = vunpack.i.h.bf16 %v3430_v56  ;;  %v3431_v61 = vunpack.i.l.bf16 %v3430_v56 }
 0xcaa   :  { %v4011_v47 = vpack.c.bf16 %v3427_v58, %v3427_v58  ;;  %v4013_v62 = vpack.c.bf16 %v3426_v59, %v3426_v59  ;;  %v4019_v1 = vpack.c.bf16 %v3432_v60, %v3432_v60  ;;  %v4021_v2 = vpack.c.bf16 %v3431_v61, %v3431_v61 }
 0xcab   :  { %v3435_v63 = vpop.permute.xlu1 %3434  ;;  %v1630_v7 = vpop.permute.xlu0 %1629 }
 0xcac   :  { %1678 = vrot.lane.b32.xlu1 %v4013_v62, %s3565_s0  ;;  %1727 = vrot.lane.b32.xlu0 %v4011_v47, %s3565_s0  ;;  %v3437_v4 = vunpack.i.h.bf16 %v3435_v63  ;;  %v3436_v5 = vunpack.i.l.bf16 %v3435_v63  ;;  %v1635_v8 = vsel %vm226_vm4, %v1630_v7, 0 }
 0xcae   :  { %v4028_v6 = vpack.c.bf16 %v3437_v4, %v3437_v4  ;;  %v4030_v3 = vpack.c.bf16 %v3436_v5, %v3436_v5 }
 0xcaf   :  { %v1581_v34 = vpop.permute.xlu1 %1580 }
 0xcb0   :  { %v1586_v35 = vsel %vm226_vm4, %v1581_v34, 0  ;;  %1776 = vrot.lane.b32.xlu1 %v4021_v2, %s3565_s0  ;;  %1825 = vrot.lane.b32.xlu0 %v4019_v1, %s3565_s0 }
 0xcb1   :  { %3252 = vmatpush3.bf16.xpose.msra.mxu1 %v1586_v35 }
 0xcb2   :  { %3257 = vmatprep.subr.bf16.mxu1 %v3561_v0 }
 0xcb4   :  { %1874 = vrot.lane.b32.xlu1 %v4030_v3, %s3565_s0  ;;  %1923 = vrot.lane.b32.xlu0 %v4028_v6, %s3565_s0 }
 0xcb8   :  { %3254 = vmatmul.mubr.msk.bf16.vlgmr.msra.gmra.mrb[36].mxu1 %vm226_vm4, %v1571_v55  ;;  %2123 = vrot.lane.b32.xlu1 %v1572_v54, %s3567_s21 }
 0xcb9   :  { %2075 = vrot.lane.b32.xlu0 %v1571_v55, %s3567_s21  ;;  %3258 = vmatpush3.bf16.xpose.msra.mxu1 %v1635_v8 }
 0xcba   :  { %3259 = vmatprep.mubr.msk.bf16.mxu1 %vm3562_vm1, %v3561_v0  ;;  %3263 = vmatprep.subr.bf16.mxu1 %v3561_v0 }
 0xcc0   :  { %3260 = vmatmul.mubr.msk.bf16.vlgmr.msra.gmra.mrb[40].mxu1 %vm226_vm4, %v1572_v54 }
 0xcc1   :  { %3265 = vmatprep.mubr.msk.bf16.mxu1 %vm3562_vm1, %v3561_v0 }
 0xd1e   :  { %v1679_v9 = vpop.permute.xlu1 %1678  ;;  %v1728_v10 = vpop.permute.xlu0 %1727 }
 0xd1f   :  { %v1684_v11 = vsel %vm226_vm4, %v1679_v9, 0  ;;  %v1733_v12 = vsel %vm226_vm4, %v1728_v10, 0 }
 0xd20   :  { %3264 = vmatpush3.bf16.xpose.msra.mxu1 %v1684_v11  ;;  %3270 = vmatpush3.bf16.xpose.msra.mxu0 %v1733_v12 }
 0xd21   :  { %3275 = vmatprep.subr.bf16.mxu1 %v3561_v0  ;;  %3281 = vmatprep.subr.bf16.mxu0 %v3561_v0 }
 0xd22   :  { %v1777_v13 = vpop.permute.xlu1 %1776  ;;  %v1826_v14 = vpop.permute.xlu0 %1825 }
 0xd23   :  { %v1782_v43 = vsel %vm226_vm4, %v1777_v13, 0  ;;  %v1831_v15 = vsel %vm226_vm4, %v1826_v14, 0 }
 0xd26   :  { %v1875_v16 = vpop.permute.xlu1 %1874  ;;  %v1924_v19 = vpop.permute.xlu0 %1923 }
 0xd27   :  { %3266 = vmatmul.mubr.msk.bf16.vlgmr.msra.gmra.mrb[44].mxu1 %vm226_vm4, %v4013_v62  ;;  %3272 = vmatmul.mubr.msk.bf16.vlgmr.msra.gmra.mrb[52].mxu0 %vm226_vm4, %v4011_v47  ;;  %v1880_v20 = vsel %vm226_vm4, %v1875_v16, 0  ;;  %v1929_v21 = vsel %vm226_vm4, %v1924_v19, 0 }
 0xd28   :  { %3276 = vmatpush3.bf16.xpose.msra.mxu1 %v1782_v43  ;;  %3282 = vmatpush3.bf16.xpose.msra.mxu0 %v1831_v15 }
 0xd29   :  { %3277 = vmatprep.mubr.msk.bf16.mxu1 %vm3562_vm1, %v3561_v0  ;;  %3283 = vmatprep.mubr.msk.bf16.mxu0 %vm3562_vm1, %v3561_v0 }
 0xd2a   :  { %3287 = vmatprep.subr.bf16.mxu1 %v3561_v0  ;;  %3293 = vmatprep.subr.bf16.mxu0 %v3561_v0  ;;  %v2124_v22 = vpop.permute.xlu1 %2123 }
 0xd2b   :  { %v2076_v23 = vpop.permute.xlu0 %2075  ;;  %v2129_v24 = vsel %vm725_vm5, %v2124_v22, 0 }
 0xd2c   :  { %v2081_v25 = vsel %vm725_vm5, %v2076_v23, 0 }
 0xd2f   :  { %3278 = vmatmul.mubr.msk.bf16.vlgmr.msra.gmra.mrb[48].mxu1 %vm226_vm4, %v4021_v2  ;;  %3284 = vmatmul.mubr.msk.bf16.vlgmr.msra.gmra.mrb[56].mxu0 %vm226_vm4, %v4019_v1 }
 0xd30   :  { %3288 = vmatpush3.bf16.xpose.msra.mxu1 %v1880_v20  ;;  %3294 = vmatpush3.bf16.xpose.msra.mxu0 %v1929_v21 }
 0xd31   :  { %3289 = vmatprep.mubr.msk.bf16.mxu1 %vm3562_vm1, %v3561_v0  ;;  %3295 = vmatprep.mubr.msk.bf16.mxu0 %vm3562_vm1, %v3561_v0 }
 0xd32   :  { %3299 = vmatprep.subr.bf16.mxu1 %v3561_v0  ;;  %3305 = vmatprep.subr.bf16.mxu0 %v3561_v0 }
 0xd37   :  { %3290 = vmatmul.mubr.msk.bf16.vlgmr.msra.gmra.mrb[52].mxu1 %vm226_vm4, %v4030_v3  ;;  %3296 = vmatmul.mubr.msk.bf16.vlgmr.msra.gmra.mrb[60].mxu0 %vm226_vm4, %v4028_v6 }
 0xd38   :  { %3300 = vmatpush3.bf16.msra.mxu1 %v2081_v25  ;;  %3306 = vmatpush3.bf16.msra.mxu0 %v2129_v24 }
 0xd39   :  { %3301 = vmatprep.mubr.msk.bf16.mxu1 %vm3562_vm1, %v3561_v0  ;;  %3307 = vmatprep.mubr.msk.bf16.mxu0 %vm3562_vm1, %v3561_v0 }
 0xd3a   :  { %3311 = vmatprep.subr.bf16.mxu1 %v3561_v0  ;;  %3317 = vmatprep.subr.bf16.mxu0 %v3561_v0 }
 0xd8b   :  { %v1622_v26 = vpop.f32.mrb[36].mxu1 }
 0xd8c   :  { %v1971_v27 = vmul.f32 0.35355338, %v1622_v26  ;;  %v3255_v28 = vpop.f32.mrb[37].mxu1 }
 0xd8d   :  { %v1625_v17 = vpop.f32.mrb[38].mxu1 }
 0xd8e   :  { %v3256_v18 = vpop.f32.mrb[39].mxu1  ;;  %v1979_v29 = vsel %vm226_vm4, %v1971_v27, -inf }
 0xd8f   :  { %1980 = vmax.xlane.f32.xlu1 %v1979_v29 }
 0xd93   :  { %v1671_v31 = vpop.f32.mrb[40].mxu1 }
 0xd94   :  { %v1972_v32 = vmul.f32 0.35355338, %v1671_v31  ;;  %v3261_v33 = vpop.f32.mrb[41].mxu1 }
 0xd95   :  { %v1674_v36 = vpop.f32.mrb[42].mxu1 }
 0xd96   :  { %v3262_v37 = vpop.f32.mrb[43].mxu1  ;;  %v1982_v42 = vsel %vm226_vm4, %v1972_v32, -inf }
 0xd97   :  { %1983 = vmax.xlane.f32.xlu0 %v1982_v42 }
 0xdfa   :  { %v1720_v30 = vpop.f32.mrb[44].mxu1  ;;  %v1769_v46 = vpop.f32.mrb[52].mxu0 }
 0xdfb   :  { %v1973_v38 = vmul.f32 0.35355338, %v1720_v30  ;;  %v1974_v41 = vmul.f32 0.35355338, %v1769_v46  ;;  %v3267_v44 = vpop.f32.mrb[45].mxu1  ;;  %v3273_v45 = vpop.f32.mrb[53].mxu0 }
 0xdfc   :  { %v1723_v48 = vpop.f32.mrb[46].mxu1  ;;  %v1772_v49 = vpop.f32.mrb[54].mxu0 }
 0xdfd   :  { %v3268_v50 = vpop.f32.mrb[47].mxu1  ;;  %v3274_v51 = vpop.f32.mrb[55].mxu0  ;;  %v1985_v52 = vsel %vm226_vm4, %v1973_v38, -inf  ;;  %v1988_v53 = vsel %vm226_vm4, %v1974_v41, -inf }
 0xdfe   :  { %1986 = vmax.xlane.f32.xlu0 %v1985_v52  ;;  %1989 = vmax.xlane.f32.xlu1 %v1988_v53 }
 0xe02   :  { %v1818_v54 = vpop.f32.mrb[48].mxu1  ;;  %v1867_v55 = vpop.f32.mrb[56].mxu0 }
 0xe03   :  { %v4091_v56 = vmul.f32 0.35355338, %v1818_v54  ;;  %v1976_v57 = vmul.f32 0.35355338, %v1867_v55  ;;  %v3279_v58 = vpop.f32.mrb[49].mxu1  ;;  %v3285_v59 = vpop.f32.mrb[57].mxu0 }
 0xe04   :  { %v1821_v60 = vpop.f32.mrb[50].mxu1  ;;  %v1870_v61 = vpop.f32.mrb[58].mxu0 }
 0xe05   :  { %v3280_v63 = vpop.f32.mrb[51].mxu1  ;;  %v3286_v4 = vpop.f32.mrb[59].mxu0  ;;  %v1991_v5 = vsel %vm226_vm4, %v4091_v56, -inf  ;;  %v1994_v34 = vsel %vm226_vm4, %v1976_v57, -inf }
 0xe06   :  { %1992 = vmax.xlane.f32.xlu0 %v1991_v5  ;;  %1995 = vmax.xlane.f32.xlu1 %v1994_v34 }
 0xe0a   :  { %v1916_v35 = vpop.f32.mrb[52].mxu1  ;;  %v1965_v7 = vpop.f32.mrb[60].mxu0 }
 0xe0b   :  { %v4096_v8 = vmul.f32 0.35355338, %v1916_v35  ;;  %v1978_v9 = vmul.f32 0.35355338, %v1965_v7  ;;  %v3291_v10 = vpop.f32.mrb[53].mxu1  ;;  %v3297_v11 = vpop.f32.mrb[61].mxu0 }
 0xe0c   :  { %v1919_v12 = vpop.f32.mrb[54].mxu1  ;;  %v1968_v13 = vpop.f32.mrb[62].mxu0 }
 0xe0d   :  { %v3292_v14 = vpop.f32.mrb[55].mxu1  ;;  %v3298_v43 = vpop.f32.mrb[63].mxu0  ;;  %v1997_v15 = vsel %vm226_vm4, %v4096_v8, -inf  ;;  %v2000_v16 = vsel %vm226_vm4, %v1978_v9, -inf }
 0xe0e   :  { %1998 = vmax.xlane.f32.xlu0 %v1997_v15  ;;  %2001 = vmax.xlane.f32.xlu1 %v2000_v16 }
 0xe1c   :  { %v1981_v19 = vpop.xlane.xlu1 %1980 }
 0xe1d   :  { %v2003_v21 = vsub.f32 %v1971_v27, %v1981_v19 }
 0xe1f   :  { %2171 = vrot.lane.b32.xlu1 %v4013_v62, %s3567_s21  ;;  %v2011_v23 = vmul.f32 1.442695, %v2003_v21 }
 0xe21   :  { %3521 = vpow2.f32 %v2011_v23 }
 0xe24   :  { %2219 = vrot.lane.b32.xlu0 %v4011_v47, %s3567_s21  ;;  %v1984_v20 = vpop.xlane.xlu0 %1983 }
 0xe25   :  { %v2004_v22 = vsub.f32 %v1972_v32, %v1984_v20 }
 0xe27   :  { %v2013_v24 = vmul.f32 1.442695, %v2004_v22 }
 0xe29   :  { %3523 = vpow2.f32 %v2013_v24 }
 0xe2b   :  { %v3522_v25 = vpop.eup %3521 }
 0xe2c   :  { %v2027_v28 = vsel %vm226_vm4, %v3522_v25, 0.0 }
 0xe33   :  { %v3524_v26 = vpop.eup %3523 }
 0xe34   :  { %v2030_v17 = vsel %vm226_vm4, %v3524_v26, 0.0 }
 0xe43   :  { %2028 = vadd.xlane.f32.xlu0 %v2027_v28  ;;  %2031 = vadd.xlane.f32.xlu1 %v2030_v17 }
 0xe54   :  { %2267 = vrot.lane.b32.xlu1 %v4021_v2, %s3567_s21 }
 0xe8b   :  { %v1987_v47 = vpop.xlane.xlu0 %1986  ;;  %v1990_v62 = vpop.xlane.xlu1 %1989 }
 0xe8c   :  { %v2005_v18 = vsub.f32 %v1973_v38, %v1987_v47  ;;  %v2006_v27 = vsub.f32 %v1974_v41, %v1990_v62 }
 0xe8e   :  { %v2015_v29 = vmul.f32 1.442695, %v2005_v18  ;;  %v2017_v31 = vmul.f32 1.442695, %v2006_v27 }
 0xe90   :  { %3525 = vpow2.f32 %v2015_v29 }
 0xe91   :  { %3527 = vpow2.f32 %v2017_v31 }
 0xe93   :  { %v1996_v32 = vpop.xlane.xlu1 %1995  ;;  %v1993_v50 = vpop.xlane.xlu0 %1992 }
 0xe94   :  { %v2008_v33 = vsub.f32 %v1976_v57, %v1996_v32  ;;  %v2007_v51 = vsub.f32 %v4091_v56, %v1993_v50 }
 0xe96   :  { %v2021_v36 = vmul.f32 1.442695, %v2008_v33  ;;  %v2019_v53 = vmul.f32 1.442695, %v2007_v51 }
 0xe98   :  { %3529 = vpow2.f32 %v2021_v36 }
 0xe9a   :  { %v4109_v37 = vpop.eup %3525 }
 0xe9b   :  { %v4111_v42 = vpop.eup %3527  ;;  %v2002_v30 = vpop.xlane.xlu1 %2001  ;;  %v2033_v2 = vsel %vm226_vm4, %v4109_v37, 0.0 }
 0xe9c   :  { %v2010_v46 = vsub.f32 %v1978_v9, %v2002_v30  ;;  %2034 = vadd.xlane.f32.xlu0 %v2033_v2  ;;  %v2036_v38 = vsel %vm226_vm4, %v4111_v42, 0.0  ;;  %v1999_v52 = vpop.xlane.xlu0 %1998 }
 0xe9d   :  { %2037 = vadd.xlane.f32.xlu1 %v2036_v38  ;;  %v2009_v54 = vsub.f32 %v4096_v8, %v1999_v52 }
 0xe9e   :  { %v2025_v41 = vmul.f32 1.442695, %v2010_v46 }
 0xe9f   :  { %v2023_v55 = vmul.f32 1.442695, %v2009_v54  ;;  %v2172_v58 = vpop.permute.xlu1 %2171 }
 0xea0   :  { %3531 = vpow2.f32 %v2025_v41  ;;  %v2220_v57 = vpop.permute.xlu0 %2219  ;;  %v2177_v8 = vsel %vm725_vm5, %v2172_v58, 0 }
 0xea1   :  { %3533 = vpow2.f32 %v2019_v53  ;;  %v2225_v9 = vsel %vm725_vm5, %v2220_v57, 0 }
 0xea2   :  { %v4117_v44 = vpop.eup %3529  ;;  %3535 = vpow2.f32 %v2023_v55 }
 0xea3   :  { %v2042_v45 = vsel %vm226_vm4, %v4117_v44, 0.0 }
 0xea4   :  { %2043 = vadd.xlane.f32.xlu1 %v2042_v45 }
 0xeaa   :  { %v4121_v48 = vpop.eup %3531 }
 0xeab   :  { %v2048_v49 = vsel %vm226_vm4, %v4121_v48, 0.0  ;;  %v4131_v59 = vpop.eup %3533 }
 0xeac   :  { %2049 = vadd.xlane.f32.xlu1 %v2048_v49  ;;  %v4135_v56 = vpop.eup %3535 }
 0xeb2   :  { %2315 = vrot.lane.b32.xlu0 %v4019_v1, %s3567_s21  ;;  %v2039_v1 = vsel %vm226_vm4, %v4131_v59, 0.0 }
 0xebd   :  { %2363 = vrot.lane.b32.xlu1 %v4030_v3, %s3567_s21  ;;  %v2045_v3 = vsel %vm226_vm4, %v4135_v56, 0.0 }
 0xed0   :  { %v2029_v60 = vpop.xlane.xlu0 %2028  ;;  %v2032_v61 = vpop.xlane.xlu1 %2031 }
 0xed1   :  { %3537 = vrcp.f32 %v2029_v60  ;;  %2040 = vadd.xlane.f32.xlu0 %v2039_v1 }
 0xed2   :  { %3539 = vrcp.f32 %v2032_v61 }
 0xed4   :  { %v2268_v10 = vpop.permute.xlu1 %2267 }
 0xed5   :  { %2046 = vadd.xlane.f32.xlu0 %v2045_v3  ;;  %v2273_v22 = vsel %vm725_vm5, %v2268_v10, 0 }
 0xedb   :  { %v3538_v63 = vpop.eup %3537 }
 0xedc   :  { %v3540_v4 = vpop.eup %3539  ;;  %v2059_v5 = vmul.f32 %v3538_v63, %v3522_v25  ;;  %v3469_v63 = vld [vmem:[%s4293_s6 + $0x10] sm:$0xff]  }
 0xedd   :  { %v2060_v34 = vmul.f32 %v3540_v4, %v3524_v26 }
 0xede   :  { %v2067_v35 = vpack.c.bf16 %v2059_v5, %v2059_v5 }
 0xedf   :  { %v2068_v7 = vpack.c.bf16 %v2060_v34, %v2060_v34 }
 0xee0   :  { %3302 = vmatmul.mubr.msk.bf16.vlgmr.msra.gmra.mrb[56].mxu1 %vm226_vm4, %v2067_v35 }
 0xee1   :  { %3308 = vmatmul.mubr.msk.bf16.vlgmr.msra.gmra.mrb[64].mxu0 %vm226_vm4, %v2068_v7  ;;  %3312 = vmatpush3.bf16.msra.mxu1 %v2177_v8  ;;  %v3470_v8 = vld [vmem:[%s4293_s6 + $0x18] sm:$0xff]  }
 0xee2   :  { %3318 = vmatpush3.bf16.msra.mxu0 %v2225_v9  ;;  %3313 = vmatprep.mubr.msk.bf16.mxu1 %vm3562_vm1, %v3561_v0 }
 0xee3   :  { %3319 = vmatprep.mubr.msk.bf16.mxu0 %vm3562_vm1, %v3561_v0  ;;  %3323 = vmatprep.subr.bf16.mxu1 %v3561_v0 }
 0xee4   :  { %3329 = vmatprep.subr.bf16.mxu0 %v3561_v0 }
 0xeeb   :  { %2411 = vrot.lane.b32.xlu0 %v4028_v6, %s3567_s21 }
 0xf29   :  { %v2035_v11 = vpop.xlane.xlu0 %2034 }
 0xf2a   :  { %3541 = vrcp.f32 %v2035_v11  ;;  %v2038_v12 = vpop.xlane.xlu1 %2037 }
 0xf2b   :  { %3543 = vrcp.f32 %v2038_v12 }
 0xf2d   :  { %v2316_v19 = vpop.permute.xlu0 %2315 }
 0xf2e   :  { %v2321_v6 = vsel %vm725_vm5, %v2316_v19, 0 }
 0xf31   :  { %v2044_v13 = vpop.xlane.xlu1 %2043 }
 0xf32   :  { %3545 = vrcp.f32 %v2044_v13 }
 0xf34   :  { %v3542_v14 = vpop.eup %3541 }
 0xf35   :  { %v3544_v43 = vpop.eup %3543  ;;  %v2061_v15 = vmul.f32 %v3542_v14, %v4109_v37 }
 0xf36   :  { %v2062_v16 = vmul.f32 %v3544_v43, %v4111_v42 }
 0xf37   :  { %v2069_v20 = vpack.c.bf16 %v2061_v15, %v2061_v15 }
 0xf38   :  { %v2070_v21 = vpack.c.bf16 %v2062_v16, %v2062_v16 }
 0xf39   :  { %3314 = vmatmul.mubr.msk.bf16.vlgmr.msra.gmra.mrb[60].mxu1 %vm226_vm4, %v2069_v20  ;;  %v2050_v26 = vpop.xlane.xlu1 %2049 }
 0xf3a   :  { %3320 = vmatmul.mubr.msk.bf16.vlgmr.msra.gmra.mrb[68].mxu0 %vm226_vm4, %v2070_v21  ;;  %3324 = vmatpush3.bf16.msra.mxu1 %v2273_v22  ;;  %3547 = vrcp.f32 %v2050_v26 }
 0xf3b   :  { %3330 = vmatpush3.bf16.msra.mxu0 %v2321_v6  ;;  %3331 = vmatprep.mubr.msk.bf16.mxu0 %vm3562_vm1, %v3561_v0 }
 0xf3c   :  { %3341 = vmatprep.subr.bf16.mxu0 %v3561_v0  ;;  %3325 = vmatprep.mubr.msk.bf16.mxu1 %vm3562_vm1, %v3561_v0  ;;  %v3546_v23 = vpop.eup %3545 }
 0xf3d   :  { %3335 = vmatprep.subr.bf16.mxu1 %v3561_v0  ;;  %v2064_v24 = vmul.f32 %v3546_v23, %v4117_v44  ;;  %v2364_v33 = vpop.permute.xlu1 %2363 }
 0xf3e   :  { %v2369_v42 = vsel %vm725_vm5, %v2364_v33, 0 }
 0xf3f   :  { %v2072_v25 = vpack.c.bf16 %v2064_v24, %v2064_v24 }
 0xf42   :  { %3332 = vmatmul.mubr.msk.bf16.vlgmr.msra.gmra.mrb[72].mxu0 %vm226_vm4, %v2072_v25 }
 0xf43   :  { %3343 = vmatprep.mubr.msk.bf16.mxu0 %vm3562_vm1, %v3561_v0 }
 0xf44   :  { %v3548_v17 = vpop.eup %3547 }
 0xf45   :  { %v2066_v62 = vmul.f32 %v3548_v17, %v4121_v48 }
 0xf47   :  { %v2074_v31 = vpack.c.bf16 %v2066_v62, %v2066_v62 }
 0xf5e   :  { %v2041_v28 = vpop.xlane.xlu0 %2040 }
 0xf5f   :  { %3549 = vrcp.f32 %v2041_v28 }
 0xf62   :  { %v2047_v47 = vpop.xlane.xlu0 %2046 }
 0xf63   :  { %3551 = vrcp.f32 %v2047_v47 }
 0xf66   :  { %v2412_v18 = vpop.permute.xlu0 %2411 }
 0xf67   :  { %v2417_v27 = vsel %vm725_vm5, %v2412_v18, 0 }
 0xf68   :  { %3342 = vmatpush3.bf16.msra.mxu0 %v2417_v27 }
 0xf69   :  { %v3550_v29 = vpop.eup %3549  ;;  %3355 = vmatprep.subr.bf16.mxu0 %v3561_v0 }
 0xf6a   :  { %v2063_v32 = vmul.f32 %v3550_v29, %v4131_v59 }
 0xf6b   :  { %3344 = vmatmul.mubr.msk.bf16.vlgmr.msra.gmra.mrb[76].mxu0 %vm226_vm4, %v2074_v31  ;;  %v2946_v31 = vld [vmem:[%s4294_s7 + $0x1] ss:$0 sm:$0xff] }
 0xf6c   :  { %v2071_v36 = vpack.c.bf16 %v2063_v32, %v2063_v32  ;;  %3359 = vmatprep.mubr.msk.bf16.mxu0 %vm3562_vm1, %v3561_v0 }
 0xf6d   :  { %v3552_v37 = vpop.eup %3551 }
 0xf6e   :  { %3326 = vmatmul.mubr.msk.bf16.vlgmr.msra.gmra.mrb[64].mxu1 %vm226_vm4, %v2071_v36  ;;  %v2065_v30 = vmul.f32 %v3552_v37, %v4135_v56 }
 0xf6f   :  { %3336 = vmatpush3.bf16.msra.mxu1 %v2369_v42  ;;  %3337 = vmatprep.mubr.msk.bf16.mxu1 %vm3562_vm1, %v3561_v0 }
 0xf70   :  { %3347 = vmatprep.subr.bf16.mxu1 %v3561_v0  ;;  %v2073_v2 = vpack.c.bf16 %v2065_v30, %v2065_v30 }
 0xf76   :  { %3338 = vmatmul.mubr.msk.bf16.vlgmr.msra.gmra.mrb[68].mxu1 %vm226_vm4, %v2073_v2 }
 0xf77   :  { %3351 = vmatprep.mubr.msk.bf16.mxu1 %vm3562_vm1, %v3561_v0  ;;  %3348 = vmatpush3.bf16.msra.mxu1 %v3469_v63 }
 0xf78   :  { %3349 = vmatprep.subr.bf16.mxu1 %v3561_v0 }
 0xf7b   :  { %3350 = vmatpush3.bf16.msra.mxu1 %v3470_v8  ;;  %v2952_v8 = vld [vmem:[%s4297_s8 + $0x1] ss:$0 sm:$0xff] }
 0xf7c   :  { %3363 = vmatprep.subr.bf16.mxu1 %v3561_v0 }
 0xfb3   :  { %v2117_v46 = vpop.f32.mrb[56].mxu1 }
 0xfb4   :  { %v2165_v38 = vpop.f32.mrb[64].mxu0  ;;  %v3303_v41 = vpop.f32.mrb[57].mxu1 }
 0xfb5   :  { %v3309_v44 = vpop.f32.mrb[65].mxu0  ;;  %v2120_v45 = vpop.f32.mrb[58].mxu1 }
 0xfb6   :  { %v2168_v48 = vpop.f32.mrb[66].mxu0  ;;  %v3304_v49 = vpop.f32.mrb[59].mxu1 }
 0xfb7   :  { %v3310_v50 = vpop.f32.mrb[67].mxu0 }
0x100c   :  { %v2213_v51 = vpop.f32.mrb[60].mxu1 }
0x100d   :  { %v2261_v52 = vpop.f32.mrb[68].mxu0  ;;  %v3315_v53 = vpop.f32.mrb[61].mxu1 }
0x100e   :  { %v3438_v54 = vpack.i.bf16 %v2261_v52, %v2213_v51  ;;  %v3321_v55 = vpop.f32.mrb[69].mxu0  ;;  %v2216_v57 = vpop.f32.mrb[62].mxu1 }
0x100f   :  { %v2264_v58 = vpop.f32.mrb[70].mxu0  ;;  %v3316_v59 = vpop.f32.mrb[63].mxu1  ;;  %v3472_v55 = vld [vmem:[%s4295_s10 + $0x18] sm:$0xff]   ;;  %v3473_v57 = vld [vmem:[%s4296_s12 + $0x40] sm:$0xff]  }
0x1010   :  { %3439 = vrot.lane.b32.xlu1 %v3438_v54, %s3568_s22  ;;  %v3322_v60 = vpop.f32.mrb[71].mxu0  ;;  %v3474_v58 = vld [vmem:[%s4296_s12 + $0x48] sm:$0xff]   ;;  %v3475_v59 = vld [vmem:[%s4296_s12 + $0x50] sm:$0xff]  }
0x1011   :  { %v3476_v60 = vld [vmem:[%s4296_s12 + $0x58] sm:$0xff]  }
0x1015   :  { %v2357_v61 = vpop.f32.mrb[72].mxu0 }
0x1016   :  { %v3333_v1 = vpop.f32.mrb[73].mxu0 }
0x1017   :  { %v2360_v56 = vpop.f32.mrb[74].mxu0  ;;  %v3478_v1 = vld [vmem:[%s4296_s12 + $0x68] sm:$0xff]  }
0x1018   :  { %v3334_v3 = vpop.f32.mrb[75].mxu0 }
0x103e   :  { %v2453_v4 = vpop.f32.mrb[76].mxu0 }
0x103f   :  { %v3345_v5 = vpop.f32.mrb[77].mxu0 }
0x1040   :  { %v2456_v34 = vpop.f32.mrb[78].mxu0 }
0x1041   :  { %v2309_v35 = vpop.f32.mrb[64].mxu1  ;;  %v3346_v7 = vpop.f32.mrb[79].mxu0 }
0x1042   :  { %v3443_v9 = vpack.i.bf16 %v2357_v61, %v2309_v35  ;;  %v3327_v10 = vpop.f32.mrb[65].mxu1  ;;  %v3477_v61 = vld [vmem:[%s4296_s12 + $0x60] sm:$0xff]  }
0x1043   :  { %v2312_v11 = vpop.f32.mrb[66].mxu1 }
0x1044   :  { %v3328_v12 = vpop.f32.mrb[67].mxu1  ;;  %3444 = vrot.lane.b32.xlu0 %v3443_v9, %s3569_s27 }
0x1045   :  { %v2953_v12 = vld [vmem:[%s4298_s9 + $0x1] ss:$0 sm:$0xff] }
0x1049   :  { %v2405_v13 = vpop.f32.mrb[68].mxu1 }
0x104a   :  { %v3448_v14 = vpack.i.bf16 %v2453_v4, %v2405_v13  ;;  %v3339_v43 = vpop.f32.mrb[69].mxu1 }
0x104b   :  { %v2408_v15 = vpop.f32.mrb[70].mxu1 }
0x104c   :  { %v3340_v16 = vpop.f32.mrb[71].mxu1  ;;  %3449 = vrot.lane.b32.xlu1 %v3448_v14, %s3570_s28 }
0x104d   :  { %v3479_v16 = vld [vmem:[%s4296_s12 + $0x70] sm:$0xff]  }
0x1082   :  { %v3440_v19 = vpop.permute.xlu1 %3439 }
0x1083   :  { %v3442_v21 = vunpack.i.h.bf16 %v3440_v19  ;;  %v3441_v22 = vunpack.i.l.bf16 %v3440_v19  ;;  %v3480_v19 = vld [vmem:[%s4296_s12 + $0x78] sm:$0xff]  }
0x1085   :  { %v2484_v25 = vsel %vm226_vm4, %v2165_v38, %v3442_v21  ;;  %v2483_v26 = vsel %vm226_vm4, %v2117_v46, %v3441_v22 }
0x10b6   :  { %v3445_v20 = vpop.permute.xlu0 %3444 }
0x10b7   :  { %v3447_v6 = vunpack.i.h.bf16 %v3445_v20  ;;  %v3446_v23 = vunpack.i.l.bf16 %v3445_v20  ;;  %v2959_v20 = vld [vmem:[%s4299_s11 + $0x1] ss:$0 sm:$0xff] }
0x10b9   :  { %v2486_v47 = vsel %vm1131_vm6, %v2484_v25, %v3447_v6  ;;  %v2485_v62 = vsel %vm1131_vm6, %v2483_v26, %v3446_v23 }
0x10be   :  { %v3450_v24 = vpop.permute.xlu1 %3449 }
0x10bf   :  { %v3452_v28 = vunpack.i.h.bf16 %v3450_v24  ;;  %v3451_v17 = vunpack.i.l.bf16 %v3450_v24 }
0x10c1   :  { %v2488_v18 = vsel %vm1134_vm7, %v2486_v47, %v3452_v28  ;;  %v2487_v27 = vsel %vm1134_vm7, %v2485_v62, %v3451_v17 }
0x10c2   :  { %v2494_v29 = vpack.c.bf16 %v2488_v18, %v2487_v27 }
0x10c4   :  { %3352 = vmatmul.mubr.msk.bf16.vlgmr.msra.gmra.mrb[72].mxu1 %vm150_vm3, %v2494_v29 }
0x10c5   :  { %3379 = vmatprep.mubr.msk.bf16.mxu1 %vm3562_vm1, %v3561_v0  ;;  %3364 = vmatpush3.bf16.msra.mxu1 %v3473_v57  ;;  %v2991_v57 = vld [vmem:[%s4301_s14 + $0x1] ss:$0 sm:$0xff] }
0x10c6   :  { %3365 = vmatprep.subr.bf16.mxu1 %v3561_v0 }
0x10c9   :  { %3366 = vmatpush3.bf16.msra.mxu1 %v3474_v58 }
0x10ca   :  { %3367 = vmatprep.subr.bf16.mxu1 %v3561_v0 }
0x10cd   :  { %3368 = vmatpush3.bf16.msra.mxu1 %v3475_v59 }
0x10ce   :  { %3369 = vmatprep.subr.bf16.mxu1 %v3561_v0 }
0x10d1   :  { %3370 = vmatpush3.bf16.msra.mxu1 %v3476_v60  ;;  %v2992_v60 = vld [vmem:[%s4302_s15 + $0x1] ss:$0 sm:$0xff] }
0x10d2   :  { %3371 = vmatprep.subr.bf16.mxu1 %v3561_v0 }
0x10d5   :  { %3372 = vmatpush3.bf16.msra.mxu1 %v3477_v61 }
0x10d6   :  { %3373 = vmatprep.subr.bf16.mxu1 %v3561_v0 }
0x10d9   :  { %3374 = vmatpush3.bf16.msra.mxu1 %v3478_v1 }
0x10da   :  { %3375 = vmatprep.subr.bf16.mxu1 %v3561_v0 }
0x10dd   :  { %3376 = vmatpush3.bf16.msra.mxu1 %v3479_v16 }
0x10de   :  { %3377 = vmatprep.subr.bf16.mxu1 %v3561_v0 }
0x10e1   :  { %3378 = vmatpush3.bf16.msra.mxu1 %v3480_v19 }
0x1197   :  { %v2552_v32 = vpop.f32.mrb[72].mxu1 }
0x1198   :  { %v2553_v33 = vadd.f32 %v2946_v31, %v2552_v32  ;;  %v3353_v36 = vpop.f32.mrb[73].mxu1 }
0x1199   :  { %v2555_v37 = vpop.f32.mrb[74].mxu1 }
0x119a   :  { %v2556_v42 = vadd.f32 %v2946_v31, %v2555_v37  ;;  %v3354_v30 = vpop.f32.mrb[75].mxu1  ;;  %v2559_v2 = vadd.f32 %v2553_v33, %v3994_v39 }
0x119c   :  { %v2565_v46 = vsel %vm150_vm3, %v2559_v2, 0.0  ;;  %v2560_v38 = vadd.f32 %v2556_v42, %v3996_v40  ;;  %v3471_v40 = vld [vmem:[%s4295_s10 + $0x10] sm:$0xff]  }
0x119d   :  { %2566 = vadd.xlane.f32.xlu0 %v2565_v46  ;;  %3356 = vmatpush3.bf16.msra.mxu0 %v3471_v40 }
0x119e   :  { %v2568_v41 = vsel %vm150_vm3, %v2560_v38, 0.0  ;;  %3357 = vmatprep.subr.bf16.mxu0 %v3561_v0  ;;  %v2980_v0 = vld [vmem:[%s4300_s13 + $0x1] ss:$0 sm:$0xff] }
0x119f   :  { %2569 = vadd.xlane.f32.xlu1 %v2568_v41 }
0x11a1   :  { %3358 = vmatpush3.bf16.msra.mxu0 %v3472_v55 }
0x122a   :  { %v2567_v44 = vpop.xlane.xlu0 %2566 }
0x122b   :  { %v2571_v45 = vmul.f32 0.03125, %v2567_v44 }
0x122c   :  { %v2570_v48 = vpop.xlane.xlu1 %2569 }
0x122d   :  { %v2573_v49 = vsub.f32 %v2559_v2, %v2571_v45  ;;  %v2572_v50 = vmul.f32 0.03125, %v2570_v48 }
0x122f   :  { %v2574_v51 = vsub.f32 %v2560_v38, %v2572_v50  ;;  %v2575_v52 = vmul.f32 %v2573_v49, %v2573_v49  ;;  %v23_v50 = vstv %s4303_s17 }
0x1230   :  { %24 = vst [vmem:[#allocation2] sm:$0x1] %v23_v50 }
0x1231   :  { %v2577_v53 = vsel %vm150_vm3, %v2575_v52, 0.0  ;;  %v2576_v54 = vmul.f32 %v2574_v51, %v2574_v51 }
0x1232   :  { %2578 = vadd.xlane.f32.xlu0 %v2577_v53 }
0x1233   :  { %v2580_v39 = vsel %vm150_vm3, %v2576_v54, 0.0 }
0x1236   :  { %2581 = vadd.xlane.f32.xlu0 %v2580_v39 }
0x12bf   :  { %v2579_v56 = vpop.xlane.xlu0 %2578 }
0x12c0   :  { %v2583_v3 = vmul.f32 0.03125, %v2579_v56  ;;  %v2993_v56 = vld [vmem:[%s4304_s16] ss:$0 sm:$0xff] }
0x12c2   :  { %v2585_v63 = vadd.f32 1e-05, %v2583_v3 }
0x12c3   :  { %v2582_v4 = vpop.xlane.xlu0 %2581 }
0x12c4   :  { %3553 = vrsqrt.f32 %v2585_v63  ;;  %v2584_v5 = vmul.f32 0.03125, %v2582_v4 }
0x12c6   :  { %v2586_v34 = vadd.f32 1e-05, %v2584_v5 }
0x12c8   :  { %3555 = vrsqrt.f32 %v2586_v34 }
0x12ce   :  { %v3554_v35 = vpop.eup %3553 }
0x12cf   :  { %v2589_v7 = vmul.f32 %v3554_v35, %v2573_v49 }
0x12d1   :  { %v2597_v10 = vmul.f32 %v2952_v8, %v2589_v7 }
0x12d2   :  { %v3556_v9 = vpop.eup %3555 }
0x12d3   :  { %v2590_v11 = vmul.f32 %v3556_v9, %v2574_v51  ;;  %v2605_v14 = vadd.f32 %v2953_v12, %v2597_v10 }
0x12d5   :  { %v2598_v13 = vmul.f32 %v2952_v8, %v2590_v11  ;;  %v2994_v8 = vld [vmem:[#allocation2] ss:$0 sm:$0xff] }
0x12d7   :  { %v2606_v43 = vadd.f32 %v2953_v12, %v2598_v13 }
0x12d9   :  { %v2612_v15 = vpack.c.bf16 %v2606_v43, %v2605_v14 }
0x12db   :  { %3360 = vmatmul.mubr.msk.bf16.vlgmr.msra.gmra.mrb[80].mxu0 %vm150_vm3, %v2612_v15 }
0x13ae   :  { %v2670_v21 = vpop.f32.mrb[80].mxu0 }
0x13af   :  { %v2671_v22 = vadd.f32 %v2959_v20, %v2670_v21  ;;  %v3361_v6 = vpop.f32.mrb[81].mxu0 }
0x13b0   :  { %v2673_v23 = vpop.f32.mrb[82].mxu0 }
0x13b1   :  { %v2674_v24 = vadd.f32 %v2959_v20, %v2673_v23  ;;  %v3362_v25 = vpop.f32.mrb[83].mxu0  ;;  %v2677_v26 = vmax.f32 %v2671_v22, 0.0 }
0x13b3   :  { %v2678_v28 = vmax.f32 %v2674_v24, 0.0 }
0x13b5   :  { %v2696_v17 = vpack.c.bf16 %v2678_v28, %v2677_v26 }
0x13b7   :  { %3380 = vmatmul.mubr.bf16.vlgmr.msra.gmra.mrb[76].mxu1 %v2696_v17 }
0x148a   :  { %v2787_v47 = vpop.f32.mrb[76].mxu1 }
0x148b   :  { %v2788_v62 = vadd.f32 %v2980_v0, %v2787_v47  ;;  %v3381_v18 = vpop.f32.mrb[77].mxu1 }
0x148c   :  { %v2790_v27 = vpop.f32.mrb[78].mxu1 }
0x148d   :  { %v2791_v29 = vadd.f32 %v2980_v0, %v2790_v27  ;;  %v3382_v31 = vpop.f32.mrb[79].mxu1  ;;  %v2794_v32 = vadd.f32 %v2788_v62, %v2605_v14 }
0x148f   :  { %v2800_v33 = vsel %vm150_vm3, %v2794_v32, 0.0  ;;  %v2795_v36 = vadd.f32 %v2791_v29, %v2606_v43 }
0x1490   :  { %2801 = vadd.xlane.f32.xlu1 %v2800_v33 }
0x1491   :  { %v2803_v37 = vsel %vm150_vm3, %v2795_v36, 0.0 }
0x1492   :  { %2804 = vadd.xlane.f32.xlu0 %v2803_v37 }
0x151d   :  { %v2802_v42 = vpop.xlane.xlu1 %2801 }
0x151e   :  { %v2806_v30 = vmul.f32 0.03125, %v2802_v42 }
0x151f   :  { %v2805_v2 = vpop.xlane.xlu0 %2804 }
0x1520   :  { %v2808_v46 = vsub.f32 %v2794_v32, %v2806_v30  ;;  %v2807_v38 = vmul.f32 0.03125, %v2805_v2 }
0x1522   :  { %v2809_v41 = vsub.f32 %v2795_v36, %v2807_v38  ;;  %v2810_v44 = vmul.f32 %v2808_v46, %v2808_v46 }
0x1524   :  { %v2812_v45 = vsel %vm150_vm3, %v2810_v44, 0.0  ;;  %v2811_v48 = vmul.f32 %v2809_v41, %v2809_v41 }
0x1525   :  { %2813 = vadd.xlane.f32.xlu1 %v2812_v45 }
0x1526   :  { %v2815_v49 = vsel %vm150_vm3, %v2811_v48, 0.0 }
0x1527   :  { %2816 = vadd.xlane.f32.xlu0 %v2815_v49 }
0x15b2   :  { %v2814_v51 = vpop.xlane.xlu1 %2813 }
0x15b3   :  { %v2818_v52 = vmul.f32 0.03125, %v2814_v51 }
0x15b4   :  { %v2817_v53 = vpop.xlane.xlu0 %2816 }
0x15b5   :  { %v2820_v54 = vadd.f32 1e-05, %v2818_v52  ;;  %v2819_v39 = vmul.f32 0.03125, %v2817_v53 }
0x15b7   :  { %3557 = vrsqrt.f32 %v2820_v54  ;;  %v2821_v40 = vadd.f32 1e-05, %v2819_v39 }
0x15b9   :  { %3559 = vrsqrt.f32 %v2821_v40 }
0x15c1   :  { %v3558_v55 = vpop.eup %3557 }
0x15c2   :  { %v2824_v58 = vmul.f32 %v3558_v55, %v2808_v46 }
0x15c3   :  { %v3560_v59 = vpop.eup %3559 }
0x15c4   :  { %v2832_v61 = vmul.f32 %v2991_v57, %v2824_v58  ;;  %v2825_v1 = vmul.f32 %v3560_v59, %v2809_v41 }
0x15c6   :  { %v2840_v3 = vadd.f32 %v2992_v60, %v2832_v61  ;;  %v2833_v63 = vmul.f32 %v2991_v57, %v2825_v1 }
0x15c8   :  { %v2849_v4 = vmul.f32 %v2993_v56, %v2840_v3  ;;  %v2841_v5 = vadd.f32 %v2992_v60, %v2833_v63 }
0x15ca   :  { %v2851_v34 = vsel %vm150_vm3, %v2849_v4, 0.0  ;;  %v2850_v35 = vmul.f32 %v2993_v56, %v2841_v5 }
0x15cb   :  { %2852 = vadd.xlane.f32.xlu1 %v2851_v34 }
0x15cc   :  { %v2854_v7 = vsel %vm150_vm3, %v2850_v35, 0.0 }
0x15cd   :  { %2855 = vadd.xlane.f32.xlu0 %v2854_v7 }
0x1658   :  { %v2853_v9 = vpop.xlane.xlu1 %2852 }
0x1659   :  { %v2864_v10 = vadd.f32 %v2994_v8, %v2853_v9 }
0x165a   :  { %v2856_v11 = vpop.xlane.xlu0 %2855 }
0x165b   :  { %2867 = vst.msk [vmem:[%s4305_s18] sm:$0xff] %vm2866_vm8, %v2864_v10  ;;  %v2865_v12 = vadd.f32 %v2994_v8, %v2856_v11 }
0x165d   :  { %2868 = vst.msk [vmem:[%s4305_s18 + $0x8] sm:$0xff] %vm2866_vm8, %v2865_v12 }

</bundles_post_ra>
